<compile_context>
chip_gen: v7x
topology: tpu7x:2x2x1
jax: 0.10.0
libtpu: 0.0.40
codegen_flags: <defaults>
</compile_context>

<pallas_src>
import functools

import jax
import jax.numpy as jnp
from jax import lax
from jax.experimental import pallas as pl
from jax.experimental.pallas import tpu as pltpu


def _lstm_recurrence_kernel(xw_ref, whh_ref, h_all_ref):
    """Sequential LSTM recurrence (single invocation, everything in VMEM).

    xw_ref:    (L, B, 4H) precomputed x_t @ W_ih + (b_ih + b_hh), time-major.
    whh_ref:   (H, 4H)    recurrent weight, pre-transposed for h @ W.
    h_all_ref: (L, B, H)  hidden state for every kept timestep (output).
    """
    L, B, H4 = xw_ref.shape
    H = whh_ref.shape[0]

    # Hoist out of the loop: weight vregs and the gate-selection mask.
    whh = whh_ref[...]
    lane = lax.broadcasted_iota(jnp.int32, (B, H4), dimension=1)
    is_g = (lane >= 2 * H) & (lane < 3 * H)   # tanh gate lanes (PyTorch order i,f,g,o)

    def step(t, carry):
        h, c = carry
        # Only the recurrent matmul remains on the serial critical path.
        gates = xw_ref[t] + jnp.dot(h, whh, preferred_element_type=jnp.float32)
        # Full-width activations on the (B, 4H) vreg + one VPU blend.
        act = jnp.where(is_g, jnp.tanh(gates), jax.nn.sigmoid(gates))
        i_g = act[:, 0 * H:1 * H]
        f_g = act[:, 1 * H:2 * H]
        g_g = act[:, 2 * H:3 * H]
        o_g = act[:, 3 * H:4 * H]
        c_new = f_g * c + i_g * g_g
        h_new = o_g * jnp.tanh(c_new)
        h_all_ref[t] = h_new                   # leading-dim store: plain address offset
        return h_new, c_new

    zeros = jnp.zeros((B, H), jnp.float32)
    lax.fori_loop(0, L, step, (zeros, zeros), unroll=True)


@functools.partial(jax.jit, static_argnames=("length_prediction",))
def lstm_forward(x, wih, whh, bias, wlin, blin, *, length_prediction=24):
    """x: (B, T, D) batch-first float32. Returns (B, min(T, length_prediction), out)."""
    B, T, D = x.shape
    H = whh.shape[0]
    out_size = wlin.shape[1]
    L = min(T, length_prediction)

    # Hoisted input projection: one matmul over all kept timesteps, emitted
    # time-major (L, B, 4H) so the kernel indexes time along the leading dim.
    xw = jnp.einsum("btd,dh->tbh", x[:, :L], wih,
                    preferred_element_type=jnp.float32) + bias[0]

    h_all = pl.pallas_call(
        _lstm_recurrence_kernel,
        out_shape=jax.ShapeDtypeStruct((L, B, H), jnp.float32),
        in_specs=[
            pl.BlockSpec(memory_space=pltpu.MemorySpace.VMEM),   # xw  (L, B, 4H)
            pl.BlockSpec(memory_space=pltpu.MemorySpace.VMEM),   # W_hh (H, 4H)
        ],
        out_specs=pl.BlockSpec(memory_space=pltpu.MemorySpace.VMEM),
    )(xw, whh)

    # Batched linear head: one (L*B, H) @ (H, out) matmul, emitted directly
    # batch-first (B, L, out) — no per-step lane-sparse stores, no transpose.
    pred = jnp.einsum("lbh,ho->blo", h_all, wlin,
                      preferred_element_type=jnp.float32) + blin[0]
    return pred


def _reference_forward(x, wih, whh, bias, wlin, blin, length_prediction):
    """Pure-JAX reference (lax.scan) mirroring torch.nn.LSTM + Linear."""
    B, T, D = x.shape
    H = whh.shape[0]

    def step(carry, x_t):
        h, c = carry
        gates = x_t @ wih + h @ whh + bias[0]
        i = jax.nn.sigmoid(gates[:, :H])
        f = jax.nn.sigmoid(gates[:, H:2 * H])
        g = jnp.tanh(gates[:, 2 * H:3 * H])
        o = jax.nn.sigmoid(gates[:, 3 * H:])
        c = f * c + i * g
        h = o * jnp.tanh(c)
        return (h, c), h

    h0 = jnp.zeros((B, H), jnp.float32)
    c0 = jnp.zeros((B, H), jnp.float32)
    _, hs = lax.scan(step, (h0, c0), jnp.transpose(x, (1, 0, 2)))
    lstm_out = jnp.transpose(hs, (1, 0, 2))                        # (B, T, H)
    pred = lstm_out @ wlin + blin[0]
    return pred[:, :length_prediction]


def init_params(key, input_size=14, hidden_size=32, out_size=1):
    """Deterministic init matching PyTorch shapes (uniform(-1/sqrt(H), 1/sqrt(H)))."""
    k = 1.0 / jnp.sqrt(jnp.float32(hidden_size))
    ks = jax.random.split(key, 6)
    # stored pre-transposed for x @ W layouts used in the kernel
    wih = jax.random.uniform(ks[0], (input_size, 4 * hidden_size), jnp.float32, -k, k)
    whh = jax.random.uniform(ks[1], (hidden_size, 4 * hidden_size), jnp.float32, -k, k)
    b_ih = jax.random.uniform(ks[2], (4 * hidden_size,), jnp.float32, -k, k)
    b_hh = jax.random.uniform(ks[3], (4 * hidden_size,), jnp.float32, -k, k)
    bias = (b_ih + b_hh).reshape(1, 4 * hidden_size)
    wlin = jax.random.uniform(ks[4], (hidden_size, out_size), jnp.float32, -k, k)
    blin = jax.random.uniform(ks[5], (1, out_size), jnp.float32, -k, k)
    return wih, whh, bias, wlin, blin


if __name__ == "__main__":
    B, T, D, H, OUT = 2, 32, 14, 32, 1
    LENGTH_PREDICTION = 24

    key = jax.random.PRNGKey(0)
    kx, kp = jax.random.split(key)
    x = jax.random.normal(kx, (B, T, D), jnp.float32)
    wih, whh, bias, wlin, blin = init_params(kp, D, H, OUT)

    pred = lstm_forward(x, wih, whh, bias, wlin, blin,
                        length_prediction=LENGTH_PREDICTION)
    pred = jax.block_until_ready(pred)

    ref = _reference_forward(x, wih, whh, bias, wlin, blin, LENGTH_PREDICTION)
    assert pred.shape == (B, LENGTH_PREDICTION, OUT), pred.shape
    assert jnp.allclose(pred, ref, atol=1e-5, rtol=1e-5), float(jnp.abs(pred - ref).max())

    print("KERNEL_OK")
</pallas_src>

<mosaic_0001>
module attributes {stable_mosaic.version = 11 : i64} {
  func.func @_lstm_recurrence_kernel(%arg0: memref<24x2x128xf32, #tpu.memory_space<vmem>>, %arg1: memref<32x128xf32, #tpu.memory_space<vmem>>, %arg2: memref<24x2x32xf32, #tpu.memory_space<vmem>>) attributes {dimension_semantics = [], scalar_prefetch = 0 : i64, scratch_operands = 0 : i64, tpu.core_type = #tpu.core_type<tc>} {
    %c0 = arith.constant 0 : index
    %c0_0 = arith.constant 0 : index
    %0 = vector.load %arg1[%c0, %c0_0] : memref<32x128xf32, #tpu.memory_space<vmem>>, vector<32x128xf32>
    %1 = tpu.iota {dimensions = array<i32: 1>} : vector<2x128xi32>
    %c64_i32 = arith.constant 64 : i32
    %2 = vector.broadcast %c64_i32 : i32 to vector<2x128xi32>
    %3 = arith.cmpi sge, %1, %2 : vector<2x128xi32>
    %c96_i32 = arith.constant 96 : i32
    %4 = vector.broadcast %c96_i32 : i32 to vector<2x128xi32>
    %5 = arith.cmpi slt, %1, %4 : vector<2x128xi32>
    %6 = arith.andi %3, %5 : vector<2x128xi1>
    %cst = arith.constant 0.000000e+00 : f32
    %7 = vector.broadcast %cst : f32 to vector<2x32xf32>
    %c0_i32 = arith.constant 0 : i32
    %8 = arith.index_cast %c0_i32 : i32 to index
    %c0_1 = arith.constant 0 : index
    %c0_2 = arith.constant 0 : index
    %9 = vector.load %arg0[%8, %c0_1, %c0_2] : memref<24x2x128xf32, #tpu.memory_space<vmem>>, vector<1x2x128xf32>
    %10 = vector.shape_cast %9 : vector<1x2x128xf32> to vector<2x128xf32>
    %cst_3 = arith.constant dense<0.000000e+00> : vector<2x128xf32>
    %11 = tpu.matmul %7, %0, %cst_3 {dimension_numbers = #tpu.dot_dimension_numbers<[1], [0], [0], [1], [0, 0, 1, 1], [], []>} : vector<2x32xf32>, vector<32x128xf32>, vector<2x128xf32> -> vector<2x128xf32>
    %12 = arith.addf %10, %11 : vector<2x128xf32>
    %13 = math.tanh %12 : vector<2x128xf32>
    %14 = arith.negf %12 : vector<2x128xf32>
    %15 = math.exp %14 : vector<2x128xf32>
    %cst_4 = arith.constant 1.000000e+00 : f32
    %16 = vector.broadcast %cst_4 : f32 to vector<2x128xf32>
    %17 = arith.addf %16, %15 : vector<2x128xf32>
    %18 = arith.divf %16, %17 : vector<2x128xf32>
    %19 = arith.select %6, %13, %18 : vector<2x128xi1>, vector<2x128xf32>
    %20 = vector.extract_strided_slice %19 {offsets = [0, 0], sizes = [2, 32], strides = [1, 1]} : vector<2x128xf32> to vector<2x32xf32>
    %21 = vector.extract_strided_slice %19 {offsets = [0, 32], sizes = [2, 32], strides = [1, 1]} : vector<2x128xf32> to vector<2x32xf32>
    %22 = vector.extract_strided_slice %19 {offsets = [0, 64], sizes = [2, 32], strides = [1, 1]} : vector<2x128xf32> to vector<2x32xf32>
    %23 = vector.extract_strided_slice %19 {offsets = [0, 96], sizes = [2, 32], strides = [1, 1]} : vector<2x128xf32> to vector<2x32xf32>
    %24 = arith.mulf %21, %7 : vector<2x32xf32>
    %25 = arith.mulf %20, %22 : vector<2x32xf32>
    %26 = arith.addf %24, %25 : vector<2x32xf32>
    %27 = math.tanh %26 : vector<2x32xf32>
    %28 = arith.mulf %23, %27 : vector<2x32xf32>
    %29 = arith.index_cast %c0_i32 : i32 to index
    %c0_5 = arith.constant 0 : index
    %c0_6 = arith.constant 0 : index
    %30 = vector.load %arg2[%29, %c0_5, %c0_6] : memref<24x2x32xf32, #tpu.memory_space<vmem>>, vector<1x2x32xf32>
    %31 = vector.shape_cast %30 : vector<1x2x32xf32> to vector<2x32xf32>
    %32 = vector.shape_cast %28 : vector<2x32xf32> to vector<1x2x32xf32>
    tpu.vector_store %arg2[%29, %c0_5, %c0_6], %32 {strides = array<i32>} : memref<24x2x32xf32, #tpu.memory_space<vmem>>, vector<1x2x32xf32>,
    %c1_i32 = arith.constant 1 : i32
    %33 = arith.index_cast %c1_i32 : i32 to index
    %c0_7 = arith.constant 0 : index
    %c0_8 = arith.constant 0 : index
    %34 = vector.load %arg0[%33, %c0_7, %c0_8] : memref<24x2x128xf32, #tpu.memory_space<vmem>>, vector<1x2x128xf32>
    %35 = vector.shape_cast %34 : vector<1x2x128xf32> to vector<2x128xf32>
    %cst_9 = arith.constant dense<0.000000e+00> : vector<2x128xf32>
    %36 = tpu.matmul %28, %0, %cst_9 {dimension_numbers = #tpu.dot_dimension_numbers<[1], [0], [0], [1], [0, 0, 1, 1], [], []>} : vector<2x32xf32>, vector<32x128xf32>, vector<2x128xf32> -> vector<2x128xf32>
    %37 = arith.addf %35, %36 : vector<2x128xf32>
    %38 = math.tanh %37 : vector<2x128xf32>
    %39 = arith.negf %37 : vector<2x128xf32>
    %40 = math.exp %39 : vector<2x128xf32>
    %cst_10 = arith.constant 1.000000e+00 : f32
    %41 = vector.broadcast %cst_10 : f32 to vector<2x128xf32>
    %42 = arith.addf %41, %40 : vector<2x128xf32>
    %43 = arith.divf %41, %42 : vector<2x128xf32>
    %44 = arith.select %6, %38, %43 : vector<2x128xi1>, vector<2x128xf32>
    %45 = vector.extract_strided_slice %44 {offsets = [0, 0], sizes = [2, 32], strides = [1, 1]} : vector<2x128xf32> to vector<2x32xf32>
    %46 = vector.extract_strided_slice %44 {offsets = [0, 32], sizes = [2, 32], strides = [1, 1]} : vector<2x128xf32> to vector<2x32xf32>
    %47 = vector.extract_strided_slice %44 {offsets = [0, 64], sizes = [2, 32], strides = [1, 1]} : vector<2x128xf32> to vector<2x32xf32>
    %48 = vector.extract_strided_slice %44 {offsets = [0, 96], sizes = [2, 32], strides = [1, 1]} : vector<2x128xf32> to vector<2x32xf32>
    %49 = arith.mulf %46, %26 : vector<2x32xf32>
    %50 = arith.mulf %45, %47 : vector<2x32xf32>
    %51 = arith.addf %49, %50 : vector<2x32xf32>
    %52 = math.tanh %51 : vector<2x32xf32>
    %53 = arith.mulf %48, %52 : vector<2x32xf32>
    %54 = arith.index_cast %c1_i32 : i32 to index
    %c0_11 = arith.constant 0 : index
    %c0_12 = arith.constant 0 : index
    %55 = vector.load %arg2[%54, %c0_11, %c0_12] : memref<24x2x32xf32, #tpu.memory_space<vmem>>, vector<1x2x32xf32>
    %56 = vector.shape_cast %55 : vector<1x2x32xf32> to vector<2x32xf32>
    %57 = vector.shape_cast %53 : vector<2x32xf32> to vector<1x2x32xf32>
    tpu.vector_store %arg2[%54, %c0_11, %c0_12], %57 {strides = array<i32>} : memref<24x2x32xf32, #tpu.memory_space<vmem>>, vector<1x2x32xf32>,
    %c2_i32 = arith.constant 2 : i32
    %58 = arith.index_cast %c2_i32 : i32 to index
    %c0_13 = arith.constant 0 : index
    %c0_14 = arith.constant 0 : index
    %59 = vector.load %arg0[%58, %c0_13, %c0_14] : memref<24x2x128xf32, #tpu.memory_space<vmem>>, vector<1x2x128xf32>
    %60 = vector.shape_cast %59 : vector<1x2x128xf32> to vector<2x128xf32>
    %cst_15 = arith.constant dense<0.000000e+00> : vector<2x128xf32>
    %61 = tpu.matmul %53, %0, %cst_15 {dimension_numbers = #tpu.dot_dimension_numbers<[1], [0], [0], [1], [0, 0, 1, 1], [], []>} : vector<2x32xf32>, vector<32x128xf32>, vector<2x128xf32> -> vector<2x128xf32>
    %62 = arith.addf %60, %61 : vector<2x128xf32>
    %63 = math.tanh %62 : vector<2x128xf32>
    %64 = arith.negf %62 : vector<2x128xf32>
    %65 = math.exp %64 : vector<2x128xf32>
    %cst_16 = arith.constant 1.000000e+00 : f32
    %66 = vector.broadcast %cst_16 : f32 to vector<2x128xf32>
    %67 = arith.addf %66, %65 : vector<2x128xf32>
    %68 = arith.divf %66, %67 : vector<2x128xf32>
    %69 = arith.select %6, %63, %68 : vector<2x128xi1>, vector<2x128xf32>
    %70 = vector.extract_strided_slice %69 {offsets = [0, 0], sizes = [2, 32], strides = [1, 1]} : vector<2x128xf32> to vector<2x32xf32>
    %71 = vector.extract_strided_slice %69 {offsets = [0, 32], sizes = [2, 32], strides = [1, 1]} : vector<2x128xf32> to vector<2x32xf32>
    %72 = vector.extract_strided_slice %69 {offsets = [0, 64], sizes = [2, 32], strides = [1, 1]} : vector<2x128xf32> to vector<2x32xf32>
    %73 = vector.extract_strided_slice %69 {offsets = [0, 96], sizes = [2, 32], strides = [1, 1]} : vector<2x128xf32> to vector<2x32xf32>
    %74 = arith.mulf %71, %51 : vector<2x32xf32>
    %75 = arith.mulf %70, %72 : vector<2x32xf32>
    %76 = arith.addf %74, %75 : vector<2x32xf32>
    %77 = math.tanh %76 : vector<2x32xf32>
    %78 = arith.mulf %73, %77 : vector<2x32xf32>
    %79 = arith.index_cast %c2_i32 : i32 to index
    %c0_17 = arith.constant 0 : index
    %c0_18 = arith.constant 0 : index
    %80 = vector.load %arg2[%79, %c0_17, %c0_18] : memref<24x2x32xf32, #tpu.memory_space<vmem>>, vector<1x2x32xf32>
    %81 = vector.shape_cast %80 : vector<1x2x32xf32> to vector<2x32xf32>
    %82 = vector.shape_cast %78 : vector<2x32xf32> to vector<1x2x32xf32>
    tpu.vector_store %arg2[%79, %c0_17, %c0_18], %82 {strides = array<i32>} : memref<24x2x32xf32, #tpu.memory_space<vmem>>, vector<1x2x32xf32>,
    %c3_i32 = arith.constant 3 : i32
    %83 = arith.index_cast %c3_i32 : i32 to index
    %c0_19 = arith.constant 0 : index
    %c0_20 = arith.constant 0 : index
    %84 = vector.load %arg0[%83, %c0_19, %c0_20] : memref<24x2x128xf32, #tpu.memory_space<vmem>>, vector<1x2x128xf32>
    %85 = vector.shape_cast %84 : vector<1x2x128xf32> to vector<2x128xf32>
    %cst_21 = arith.constant dense<0.000000e+00> : vector<2x128xf32>
    %86 = tpu.matmul %78, %0, %cst_21 {dimension_numbers = #tpu.dot_dimension_numbers<[1], [0], [0], [1], [0, 0, 1, 1], [], []>} : vector<2x32xf32>, vector<32x128xf32>, vector<2x128xf32> -> vector<2x128xf32>
    %87 = arith.addf %85, %86 : vector<2x128xf32>
    %88 = math.tanh %87 : vector<2x128xf32>
    %89 = arith.negf %87 : vector<2x128xf32>
    %90 = math.exp %89 : vector<2x128xf32>
    %cst_22 = arith.constant 1.000000e+00 : f32
    %91 = vector.broadcast %cst_22 : f32 to vector<2x128xf32>
    %92 = arith.addf %91, %90 : vector<2x128xf32>
    %93 = arith.divf %91, %92 : vector<2x128xf32>
    %94 = arith.select %6, %88, %93 : vector<2x128xi1>, vector<2x128xf32>
    %95 = vector.extract_strided_slice %94 {offsets = [0, 0], sizes = [2, 32], strides = [1, 1]} : vector<2x128xf32> to vector<2x32xf32>
    %96 = vector.extract_strided_slice %94 {offsets = [0, 32], sizes = [2, 32], strides = [1, 1]} : vector<2x128xf32> to vector<2x32xf32>
    %97 = vector.extract_strided_slice %94 {offsets = [0, 64], sizes = [2, 32], strides = [1, 1]} : vector<2x128xf32> to vector<2x32xf32>
    %98 = vector.extract_strided_slice %94 {offsets = [0, 96], sizes = [2, 32], strides = [1, 1]} : vector<2x128xf32> to vector<2x32xf32>
    %99 = arith.mulf %96, %76 : vector<2x32xf32>
    %100 = arith.mulf %95, %97 : vector<2x32xf32>
    %101 = arith.addf %99, %100 : vector<2x32xf32>
    %102 = math.tanh %101 : vector<2x32xf32>
    %103 = arith.mulf %98, %102 : vector<2x32xf32>
    %104 = arith.index_cast %c3_i32 : i32 to index
    %c0_23 = arith.constant 0 : index
    %c0_24 = arith.constant 0 : index
    %105 = vector.load %arg2[%104, %c0_23, %c0_24] : memref<24x2x32xf32, #tpu.memory_space<vmem>>, vector<1x2x32xf32>
    %106 = vector.shape_cast %105 : vector<1x2x32xf32> to vector<2x32xf32>
    %107 = vector.shape_cast %103 : vector<2x32xf32> to vector<1x2x32xf32>
    tpu.vector_store %arg2[%104, %c0_23, %c0_24], %107 {strides = array<i32>} : memref<24x2x32xf32, #tpu.memory_space<vmem>>, vector<1x2x32xf32>,
    %c4_i32 = arith.constant 4 : i32
    %108 = arith.index_cast %c4_i32 : i32 to index
    %c0_25 = arith.constant 0 : index
    %c0_26 = arith.constant 0 : index
    %109 = vector.load %arg0[%108, %c0_25, %c0_26] : memref<24x2x128xf32, #tpu.memory_space<vmem>>, vector<1x2x128xf32>
    %110 = vector.shape_cast %109 : vector<1x2x128xf32> to vector<2x128xf32>
    %cst_27 = arith.constant dense<0.000000e+00> : vector<2x128xf32>
    %111 = tpu.matmul %103, %0, %cst_27 {dimension_numbers = #tpu.dot_dimension_numbers<[1], [0], [0], [1], [0, 0, 1, 1], [], []>} : vector<2x32xf32>, vector<32x128xf32>, vector<2x128xf32> -> vector<2x128xf32>
    %112 = arith.addf %110, %111 : vector<2x128xf32>
    %113 = math.tanh %112 : vector<2x128xf32>
    %114 = arith.negf %112 : vector<2x128xf32>
    %115 = math.exp %114 : vector<2x128xf32>
    %cst_28 = arith.constant 1.000000e+00 : f32
    %116 = vector.broadcast %cst_28 : f32 to vector<2x128xf32>
    %117 = arith.addf %116, %115 : vector<2x128xf32>
    %118 = arith.divf %116, %117 : vector<2x128xf32>
    %119 = arith.select %6, %113, %118 : vector<2x128xi1>, vector<2x128xf32>
    %120 = vector.extract_strided_slice %119 {offsets = [0, 0], sizes = [2, 32], strides = [1, 1]} : vector<2x128xf32> to vector<2x32xf32>
    %121 = vector.extract_strided_slice %119 {offsets = [0, 32], sizes = [2, 32], strides = [1, 1]} : vector<2x128xf32> to vector<2x32xf32>
    %122 = vector.extract_strided_slice %119 {offsets = [0, 64], sizes = [2, 32], strides = [1, 1]} : vector<2x128xf32> to vector<2x32xf32>
    %123 = vector.extract_strided_slice %119 {offsets = [0, 96], sizes = [2, 32], strides = [1, 1]} : vector<2x128xf32> to vector<2x32xf32>
    %124 = arith.mulf %121, %101 : vector<2x32xf32>
    %125 = arith.mulf %120, %122 : vector<2x32xf32>
    %126 = arith.addf %124, %125 : vector<2x32xf32>
    %127 = math.tanh %126 : vector<2x32xf32>
    %128 = arith.mulf %123, %127 : vector<2x32xf32>
    %129 = arith.index_cast %c4_i32 : i32 to index
    %c0_29 = arith.constant 0 : index
    %c0_30 = arith.constant 0 : index
    %130 = vector.load %arg2[%129, %c0_29, %c0_30] : memref<24x2x32xf32, #tpu.memory_space<vmem>>, vector<1x2x32xf32>
    %131 = vector.shape_cast %130 : vector<1x2x32xf32> to vector<2x32xf32>
    %132 = vector.shape_cast %128 : vector<2x32xf32> to vector<1x2x32xf32>
    tpu.vector_store %arg2[%129, %c0_29, %c0_30], %132 {strides = array<i32>} : memref<24x2x32xf32, #tpu.memory_space<vmem>>, vector<1x2x32xf32>,
    %c5_i32 = arith.constant 5 : i32
    %133 = arith.index_cast %c5_i32 : i32 to index
    %c0_31 = arith.constant 0 : index
    %c0_32 = arith.constant 0 : index
    %134 = vector.load %arg0[%133, %c0_31, %c0_32] : memref<24x2x128xf32, #tpu.memory_space<vmem>>, vector<1x2x128xf32>
    %135 = vector.shape_cast %134 : vector<1x2x128xf32> to vector<2x128xf32>
    %cst_33 = arith.constant dense<0.000000e+00> : vector<2x128xf32>
    %136 = tpu.matmul %128, %0, %cst_33 {dimension_numbers = #tpu.dot_dimension_numbers<[1], [0], [0], [1], [0, 0, 1, 1], [], []>} : vector<2x32xf32>, vector<32x128xf32>, vector<2x128xf32> -> vector<2x128xf32>
    %137 = arith.addf %135, %136 : vector<2x128xf32>
    %138 = math.tanh %137 : vector<2x128xf32>
    %139 = arith.negf %137 : vector<2x128xf32>
    %140 = math.exp %139 : vector<2x128xf32>
    %cst_34 = arith.constant 1.000000e+00 : f32
    %141 = vector.broadcast %cst_34 : f32 to vector<2x128xf32>
    %142 = arith.addf %141, %140 : vector<2x128xf32>
    %143 = arith.divf %141, %142 : vector<2x128xf32>
    %144 = arith.select %6, %138, %143 : vector<2x128xi1>, vector<2x128xf32>
    %145 = vector.extract_strided_slice %144 {offsets = [0, 0], sizes = [2, 32], strides = [1, 1]} : vector<2x128xf32> to vector<2x32xf32>
    %146 = vector.extract_strided_slice %144 {offsets = [0, 32], sizes = [2, 32], strides = [1, 1]} : vector<2x128xf32> to vector<2x32xf32>
    %147 = vector.extract_strided_slice %144 {offsets = [0, 64], sizes = [2, 32], strides = [1, 1]} : vector<2x128xf32> to vector<2x32xf32>
    %148 = vector.extract_strided_slice %144 {offsets = [0, 96], sizes = [2, 32], strides = [1, 1]} : vector<2x128xf32> to vector<2x32xf32>
    %149 = arith.mulf %146, %126 : vector<2x32xf32>
    %150 = arith.mulf %145, %147 : vector<2x32xf32>
    %151 = arith.addf %149, %150 : vector<2x32xf32>
    %152 = math.tanh %151 : vector<2x32xf32>
    %153 = arith.mulf %148, %152 : vector<2x32xf32>
    %154 = arith.index_cast %c5_i32 : i32 to index
    %c0_35 = arith.constant 0 : index
    %c0_36 = arith.constant 0 : index
    %155 = vector.load %arg2[%154, %c0_35, %c0_36] : memref<24x2x32xf32, #tpu.memory_space<vmem>>, vector<1x2x32xf32>
    %156 = vector.shape_cast %155 : vector<1x2x32xf32> to vector<2x32xf32>
    %157 = vector.shape_cast %153 : vector<2x32xf32> to vector<1x2x32xf32>
    tpu.vector_store %arg2[%154, %c0_35, %c0_36], %157 {strides = array<i32>} : memref<24x2x32xf32, #tpu.memory_space<vmem>>, vector<1x2x32xf32>,
    %c6_i32 = arith.constant 6 : i32
    %158 = arith.index_cast %c6_i32 : i32 to index
    %c0_37 = arith.constant 0 : index
    %c0_38 = arith.constant 0 : index
    %159 = vector.load %arg0[%158, %c0_37, %c0_38] : memref<24x2x128xf32, #tpu.memory_space<vmem>>, vector<1x2x128xf32>
    %160 = vector.shape_cast %159 : vector<1x2x128xf32> to vector<2x128xf32>
    %cst_39 = arith.constant dense<0.000000e+00> : vector<2x128xf32>
    %161 = tpu.matmul %153, %0, %cst_39 {dimension_numbers = #tpu.dot_dimension_numbers<[1], [0], [0], [1], [0, 0, 1, 1], [], []>} : vector<2x32xf32>, vector<32x128xf32>, vector<2x128xf32> -> vector<2x128xf32>
    %162 = arith.addf %160, %161 : vector<2x128xf32>
    %163 = math.tanh %162 : vector<2x128xf32>
    %164 = arith.negf %162 : vector<2x128xf32>
    %165 = math.exp %164 : vector<2x128xf32>
    %cst_40 = arith.constant 1.000000e+00 : f32
    %166 = vector.broadcast %cst_40 : f32 to vector<2x128xf32>
    %167 = arith.addf %166, %165 : vector<2x128xf32>
    %168 = arith.divf %166, %167 : vector<2x128xf32>
    %169 = arith.select %6, %163, %168 : vector<2x128xi1>, vector<2x128xf32>
    %170 = vector.extract_strided_slice %169 {offsets = [0, 0], sizes = [2, 32], strides = [1, 1]} : vector<2x128xf32> to vector<2x32xf32>
    %171 = vector.extract_strided_slice %169 {offsets = [0, 32], sizes = [2, 32], strides = [1, 1]} : vector<2x128xf32> to vector<2x32xf32>
    %172 = vector.extract_strided_slice %169 {offsets = [0, 64], sizes = [2, 32], strides = [1, 1]} : vector<2x128xf32> to vector<2x32xf32>
    %173 = vector.extract_strided_slice %169 {offsets = [0, 96], sizes = [2, 32], strides = [1, 1]} : vector<2x128xf32> to vector<2x32xf32>
    %174 = arith.mulf %171, %151 : vector<2x32xf32>
    %175 = arith.mulf %170, %172 : vector<2x32xf32>
    %176 = arith.addf %174, %175 : vector<2x32xf32>
    %177 = math.tanh %176 : vector<2x32xf32>
    %178 = arith.mulf %173, %177 : vector<2x32xf32>
    %179 = arith.index_cast %c6_i32 : i32 to index
    %c0_41 = arith.constant 0 : index
    %c0_42 = arith.constant 0 : index
    %180 = vector.load %arg2[%179, %c0_41, %c0_42] : memref<24x2x32xf32, #tpu.memory_space<vmem>>, vector<1x2x32xf32>
    %181 = vector.shape_cast %180 : vector<1x2x32xf32> to vector<2x32xf32>
    %182 = vector.shape_cast %178 : vector<2x32xf32> to vector<1x2x32xf32>
    tpu.vector_store %arg2[%179, %c0_41, %c0_42], %182 {strides = array<i32>} : memref<24x2x32xf32, #tpu.memory_space<vmem>>, vector<1x2x32xf32>,
    %c7_i32 = arith.constant 7 : i32
    %183 = arith.index_cast %c7_i32 : i32 to index
    %c0_43 = arith.constant 0 : index
    %c0_44 = arith.constant 0 : index
    %184 = vector.load %arg0[%183, %c0_43, %c0_44] : memref<24x2x128xf32, #tpu.memory_space<vmem>>, vector<1x2x128xf32>
    %185 = vector.shape_cast %184 : vector<1x2x128xf32> to vector<2x128xf32>
    %cst_45 = arith.constant dense<0.000000e+00> : vector<2x128xf32>
    %186 = tpu.matmul %178, %0, %cst_45 {dimension_numbers = #tpu.dot_dimension_numbers<[1], [0], [0], [1], [0, 0, 1, 1], [], []>} : vector<2x32xf32>, vector<32x128xf32>, vector<2x128xf32> -> vector<2x128xf32>
    %187 = arith.addf %185, %186 : vector<2x128xf32>
    %188 = math.tanh %187 : vector<2x128xf32>
    %189 = arith.negf %187 : vector<2x128xf32>
    %190 = math.exp %189 : vector<2x128xf32>
    %cst_46 = arith.constant 1.000000e+00 : f32
    %191 = vector.broadcast %cst_46 : f32 to vector<2x128xf32>
    %192 = arith.addf %191, %190 : vector<2x128xf32>
    %193 = arith.divf %191, %192 : vector<2x128xf32>
    %194 = arith.select %6, %188, %193 : vector<2x128xi1>, vector<2x128xf32>
    %195 = vector.extract_strided_slice %194 {offsets = [0, 0], sizes = [2, 32], strides = [1, 1]} : vector<2x128xf32> to vector<2x32xf32>
    %196 = vector.extract_strided_slice %194 {offsets = [0, 32], sizes = [2, 32], strides = [1, 1]} : vector<2x128xf32> to vector<2x32xf32>
    %197 = vector.extract_strided_slice %194 {offsets = [0, 64], sizes = [2, 32], strides = [1, 1]} : vector<2x128xf32> to vector<2x32xf32>
    %198 = vector.extract_strided_slice %194 {offsets = [0, 96], sizes = [2, 32], strides = [1, 1]} : vector<2x128xf32> to vector<2x32xf32>
    %199 = arith.mulf %196, %176 : vector<2x32xf32>
    %200 = arith.mulf %195, %197 : vector<2x32xf32>
    %201 = arith.addf %199, %200 : vector<2x32xf32>
    %202 = math.tanh %201 : vector<2x32xf32>
    %203 = arith.mulf %198, %202 : vector<2x32xf32>
    %204 = arith.index_cast %c7_i32 : i32 to index
    %c0_47 = arith.constant 0 : index
    %c0_48 = arith.constant 0 : index
    %205 = vector.load %arg2[%204, %c0_47, %c0_48] : memref<24x2x32xf32, #tpu.memory_space<vmem>>, vector<1x2x32xf32>
    %206 = vector.shape_cast %205 : vector<1x2x32xf32> to vector<2x32xf32>
    %207 = vector.shape_cast %203 : vector<2x32xf32> to vector<1x2x32xf32>
    tpu.vector_store %arg2[%204, %c0_47, %c0_48], %207 {strides = array<i32>} : memref<24x2x32xf32, #tpu.memory_space<vmem>>, vector<1x2x32xf32>,
    %c8_i32 = arith.constant 8 : i32
    %208 = arith.index_cast %c8_i32 : i32 to index
    %c0_49 = arith.constant 0 : index
    %c0_50 = arith.constant 0 : index
    %209 = vector.load %arg0[%208, %c0_49, %c0_50] : memref<24x2x128xf32, #tpu.memory_space<vmem>>, vector<1x2x128xf32>
    %210 = vector.shape_cast %209 : vector<1x2x128xf32> to vector<2x128xf32>
    %cst_51 = arith.constant dense<0.000000e+00> : vector<2x128xf32>
    %211 = tpu.matmul %203, %0, %cst_51 {dimension_numbers = #tpu.dot_dimension_numbers<[1], [0], [0], [1], [0, 0, 1, 1], [], []>} : vector<2x32xf32>, vector<32x128xf32>, vector<2x128xf32> -> vector<2x128xf32>
    %212 = arith.addf %210, %211 : vector<2x128xf32>
    %213 = math.tanh %212 : vector<2x128xf32>
    %214 = arith.negf %212 : vector<2x128xf32>
    %215 = math.exp %214 : vector<2x128xf32>
    %cst_52 = arith.constant 1.000000e+00 : f32
    %216 = vector.broadcast %cst_52 : f32 to vector<2x128xf32>
    %217 = arith.addf %216, %215 : vector<2x128xf32>
    %218 = arith.divf %216, %217 : vector<2x128xf32>
    %219 = arith.select %6, %213, %218 : vector<2x128xi1>, vector<2x128xf32>
    %220 = vector.extract_strided_slice %219 {offsets = [0, 0], sizes = [2, 32], strides = [1, 1]} : vector<2x128xf32> to vector<2x32xf32>
    %221 = vector.extract_strided_slice %219 {offsets = [0, 32], sizes = [2, 32], strides = [1, 1]} : vector<2x128xf32> to vector<2x32xf32>
    %222 = vector.extract_strided_slice %219 {offsets = [0, 64], sizes = [2, 32], strides = [1, 1]} : vector<2x128xf32> to vector<2x32xf32>
    %223 = vector.extract_strided_slice %219 {offsets = [0, 96], sizes = [2, 32], strides = [1, 1]} : vector<2x128xf32> to vector<2x32xf32>
    %224 = arith.mulf %221, %201 : vector<2x32xf32>
    %225 = arith.mulf %220, %222 : vector<2x32xf32>
    %226 = arith.addf %224, %225 : vector<2x32xf32>
    %227 = math.tanh %226 : vector<2x32xf32>
    %228 = arith.mulf %223, %227 : vector<2x32xf32>
    %229 = arith.index_cast %c8_i32 : i32 to index
    %c0_53 = arith.constant 0 : index
    %c0_54 = arith.constant 0 : index
    %230 = vector.load %arg2[%229, %c0_53, %c0_54] : memref<24x2x32xf32, #tpu.memory_space<vmem>>, vector<1x2x32xf32>
    %231 = vector.shape_cast %230 : vector<1x2x32xf32> to vector<2x32xf32>
    %232 = vector.shape_cast %228 : vector<2x32xf32> to vector<1x2x32xf32>
    tpu.vector_store %arg2[%229, %c0_53, %c0_54], %232 {strides = array<i32>} : memref<24x2x32xf32, #tpu.memory_space<vmem>>, vector<1x2x32xf32>,
    %c9_i32 = arith.constant 9 : i32
    %233 = arith.index_cast %c9_i32 : i32 to index
    %c0_55 = arith.constant 0 : index
    %c0_56 = arith.constant 0 : index
    %234 = vector.load %arg0[%233, %c0_55, %c0_56] : memref<24x2x128xf32, #tpu.memory_space<vmem>>, vector<1x2x128xf32>
    %235 = vector.shape_cast %234 : vector<1x2x128xf32> to vector<2x128xf32>
    %cst_57 = arith.constant dense<0.000000e+00> : vector<2x128xf32>
    %236 = tpu.matmul %228, %0, %cst_57 {dimension_numbers = #tpu.dot_dimension_numbers<[1], [0], [0], [1], [0, 0, 1, 1], [], []>} : vector<2x32xf32>, vector<32x128xf32>, vector<2x128xf32> -> vector<2x128xf32>
    %237 = arith.addf %235, %236 : vector<2x128xf32>
    %238 = math.tanh %237 : vector<2x128xf32>
    %239 = arith.negf %237 : vector<2x128xf32>
    %240 = math.exp %239 : vector<2x128xf32>
    %cst_58 = arith.constant 1.000000e+00 : f32
    %241 = vector.broadcast %cst_58 : f32 to vector<2x128xf32>
    %242 = arith.addf %241, %240 : vector<2x128xf32>
    %243 = arith.divf %241, %242 : vector<2x128xf32>
    %244 = arith.select %6, %238, %243 : vector<2x128xi1>, vector<2x128xf32>
    %245 = vector.extract_strided_slice %244 {offsets = [0, 0], sizes = [2, 32], strides = [1, 1]} : vector<2x128xf32> to vector<2x32xf32>
    %246 = vector.extract_strided_slice %244 {offsets = [0, 32], sizes = [2, 32], strides = [1, 1]} : vector<2x128xf32> to vector<2x32xf32>
    %247 = vector.extract_strided_slice %244 {offsets = [0, 64], sizes = [2, 32], strides = [1, 1]} : vector<2x128xf32> to vector<2x32xf32>
    %248 = vector.extract_strided_slice %244 {offsets = [0, 96], sizes = [2, 32], strides = [1, 1]} : vector<2x128xf32> to vector<2x32xf32>
    %249 = arith.mulf %246, %226 : vector<2x32xf32>
    %250 = arith.mulf %245, %247 : vector<2x32xf32>
    %251 = arith.addf %249, %250 : vector<2x32xf32>
    %252 = math.tanh %251 : vector<2x32xf32>
    %253 = arith.mulf %248, %252 : vector<2x32xf32>
    %254 = arith.index_cast %c9_i32 : i32 to index
    %c0_59 = arith.constant 0 : index
    %c0_60 = arith.constant 0 : index
    %255 = vector.load %arg2[%254, %c0_59, %c0_60] : memref<24x2x32xf32, #tpu.memory_space<vmem>>, vector<1x2x32xf32>
    %256 = vector.shape_cast %255 : vector<1x2x32xf32> to vector<2x32xf32>
    %257 = vector.shape_cast %253 : vector<2x32xf32> to vector<1x2x32xf32>
    tpu.vector_store %arg2[%254, %c0_59, %c0_60], %257 {strides = array<i32>} : memref<24x2x32xf32, #tpu.memory_space<vmem>>, vector<1x2x32xf32>,
    %c10_i32 = arith.constant 10 : i32
    %258 = arith.index_cast %c10_i32 : i32 to index
    %c0_61 = arith.constant 0 : index
    %c0_62 = arith.constant 0 : index
    %259 = vector.load %arg0[%258, %c0_61, %c0_62] : memref<24x2x128xf32, #tpu.memory_space<vmem>>, vector<1x2x128xf32>
    %260 = vector.shape_cast %259 : vector<1x2x128xf32> to vector<2x128xf32>
    %cst_63 = arith.constant dense<0.000000e+00> : vector<2x128xf32>
    %261 = tpu.matmul %253, %0, %cst_63 {dimension_numbers = #tpu.dot_dimension_numbers<[1], [0], [0], [1], [0, 0, 1, 1], [], []>} : vector<2x32xf32>, vector<32x128xf32>, vector<2x128xf32> -> vector<2x128xf32>
    %262 = arith.addf %260, %261 : vector<2x128xf32>
    %263 = math.tanh %262 : vector<2x128xf32>
    %264 = arith.negf %262 : vector<2x128xf32>
    %265 = math.exp %264 : vector<2x128xf32>
    %cst_64 = arith.constant 1.000000e+00 : f32
    %266 = vector.broadcast %cst_64 : f32 to vector<2x128xf32>
    %267 = arith.addf %266, %265 : vector<2x128xf32>
    %268 = arith.divf %266, %267 : vector<2x128xf32>
    %269 = arith.select %6, %263, %268 : vector<2x128xi1>, vector<2x128xf32>
    %270 = vector.extract_strided_slice %269 {offsets = [0, 0], sizes = [2, 32], strides = [1, 1]} : vector<2x128xf32> to vector<2x32xf32>
    %271 = vector.extract_strided_slice %269 {offsets = [0, 32], sizes = [2, 32], strides = [1, 1]} : vector<2x128xf32> to vector<2x32xf32>
    %272 = vector.extract_strided_slice %269 {offsets = [0, 64], sizes = [2, 32], strides = [1, 1]} : vector<2x128xf32> to vector<2x32xf32>
    %273 = vector.extract_strided_slice %269 {offsets = [0, 96], sizes = [2, 32], strides = [1, 1]} : vector<2x128xf32> to vector<2x32xf32>
    %274 = arith.mulf %271, %251 : vector<2x32xf32>
    %275 = arith.mulf %270, %272 : vector<2x32xf32>
    %276 = arith.addf %274, %275 : vector<2x32xf32>
    %277 = math.tanh %276 : vector<2x32xf32>
    %278 = arith.mulf %273, %277 : vector<2x32xf32>
    %279 = arith.index_cast %c10_i32 : i32 to index
    %c0_65 = arith.constant 0 : index
    %c0_66 = arith.constant 0 : index
    %280 = vector.load %arg2[%279, %c0_65, %c0_66] : memref<24x2x32xf32, #tpu.memory_space<vmem>>, vector<1x2x32xf32>
    %281 = vector.shape_cast %280 : vector<1x2x32xf32> to vector<2x32xf32>
    %282 = vector.shape_cast %278 : vector<2x32xf32> to vector<1x2x32xf32>
    tpu.vector_store %arg2[%279, %c0_65, %c0_66], %282 {strides = array<i32>} : memref<24x2x32xf32, #tpu.memory_space<vmem>>, vector<1x2x32xf32>,
    %c11_i32 = arith.constant 11 : i32
    %283 = arith.index_cast %c11_i32 : i32 to index
    %c0_67 = arith.constant 0 : index
    %c0_68 = arith.constant 0 : index
    %284 = vector.load %arg0[%283, %c0_67, %c0_68] : memref<24x2x128xf32, #tpu.memory_space<vmem>>, vector<1x2x128xf32>
    %285 = vector.shape_cast %284 : vector<1x2x128xf32> to vector<2x128xf32>
    %cst_69 = arith.constant dense<0.000000e+00> : vector<2x128xf32>
    %286 = tpu.matmul %278, %0, %cst_69 {dimension_numbers = #tpu.dot_dimension_numbers<[1], [0], [0], [1], [0, 0, 1, 1], [], []>} : vector<2x32xf32>, vector<32x128xf32>, vector<2x128xf32> -> vector<2x128xf32>
    %287 = arith.addf %285, %286 : vector<2x128xf32>
    %288 = math.tanh %287 : vector<2x128xf32>
    %289 = arith.negf %287 : vector<2x128xf32>
    %290 = math.exp %289 : vector<2x128xf32>
    %cst_70 = arith.constant 1.000000e+00 : f32
    %291 = vector.broadcast %cst_70 : f32 to vector<2x128xf32>
    %292 = arith.addf %291, %290 : vector<2x128xf32>
    %293 = arith.divf %291, %292 : vector<2x128xf32>
    %294 = arith.select %6, %288, %293 : vector<2x128xi1>, vector<2x128xf32>
    %295 = vector.extract_strided_slice %294 {offsets = [0, 0], sizes = [2, 32], strides = [1, 1]} : vector<2x128xf32> to vector<2x32xf32>
    %296 = vector.extract_strided_slice %294 {offsets = [0, 32], sizes = [2, 32], strides = [1, 1]} : vector<2x128xf32> to vector<2x32xf32>
    %297 = vector.extract_strided_slice %294 {offsets = [0, 64], sizes = [2, 32], strides = [1, 1]} : vector<2x128xf32> to vector<2x32xf32>
    %298 = vector.extract_strided_slice %294 {offsets = [0, 96], sizes = [2, 32], strides = [1, 1]} : vector<2x128xf32> to vector<2x32xf32>
    %299 = arith.mulf %296, %276 : vector<2x32xf32>
    %300 = arith.mulf %295, %297 : vector<2x32xf32>
    %301 = arith.addf %299, %300 : vector<2x32xf32>
    %302 = math.tanh %301 : vector<2x32xf32>
    %303 = arith.mulf %298, %302 : vector<2x32xf32>
    %304 = arith.index_cast %c11_i32 : i32 to index
    %c0_71 = arith.constant 0 : index
    %c0_72 = arith.constant 0 : index
    %305 = vector.load %arg2[%304, %c0_71, %c0_72] : memref<24x2x32xf32, #tpu.memory_space<vmem>>, vector<1x2x32xf32>
    %306 = vector.shape_cast %305 : vector<1x2x32xf32> to vector<2x32xf32>
    %307 = vector.shape_cast %303 : vector<2x32xf32> to vector<1x2x32xf32>
    tpu.vector_store %arg2[%304, %c0_71, %c0_72], %307 {strides = array<i32>} : memref<24x2x32xf32, #tpu.memory_space<vmem>>, vector<1x2x32xf32>,
    %c12_i32 = arith.constant 12 : i32
    %308 = arith.index_cast %c12_i32 : i32 to index
    %c0_73 = arith.constant 0 : index
    %c0_74 = arith.constant 0 : index
    %309 = vector.load %arg0[%308, %c0_73, %c0_74] : memref<24x2x128xf32, #tpu.memory_space<vmem>>, vector<1x2x128xf32>
    %310 = vector.shape_cast %309 : vector<1x2x128xf32> to vector<2x128xf32>
    %cst_75 = arith.constant dense<0.000000e+00> : vector<2x128xf32>
    %311 = tpu.matmul %303, %0, %cst_75 {dimension_numbers = #tpu.dot_dimension_numbers<[1], [0], [0], [1], [0, 0, 1, 1], [], []>} : vector<2x32xf32>, vector<32x128xf32>, vector<2x128xf32> -> vector<2x128xf32>
    %312 = arith.addf %310, %311 : vector<2x128xf32>
    %313 = math.tanh %312 : vector<2x128xf32>
    %314 = arith.negf %312 : vector<2x128xf32>
    %315 = math.exp %314 : vector<2x128xf32>
    %cst_76 = arith.constant 1.000000e+00 : f32
    %316 = vector.broadcast %cst_76 : f32 to vector<2x128xf32>
    %317 = arith.addf %316, %315 : vector<2x128xf32>
    %318 = arith.divf %316, %317 : vector<2x128xf32>
    %319 = arith.select %6, %313, %318 : vector<2x128xi1>, vector<2x128xf32>
    %320 = vector.extract_strided_slice %319 {offsets = [0, 0], sizes = [2, 32], strides = [1, 1]} : vector<2x128xf32> to vector<2x32xf32>
    %321 = vector.extract_strided_slice %319 {offsets = [0, 32], sizes = [2, 32], strides = [1, 1]} : vector<2x128xf32> to vector<2x32xf32>
    %322 = vector.extract_strided_slice %319 {offsets = [0, 64], sizes = [2, 32], strides = [1, 1]} : vector<2x128xf32> to vector<2x32xf32>
    %323 = vector.extract_strided_slice %319 {offsets = [0, 96], sizes = [2, 32], strides = [1, 1]} : vector<2x128xf32> to vector<2x32xf32>
    %324 = arith.mulf %321, %301 : vector<2x32xf32>
    %325 = arith.mulf %320, %322 : vector<2x32xf32>
    %326 = arith.addf %324, %325 : vector<2x32xf32>
    %327 = math.tanh %326 : vector<2x32xf32>
    %328 = arith.mulf %323, %327 : vector<2x32xf32>
    %329 = arith.index_cast %c12_i32 : i32 to index
    %c0_77 = arith.constant 0 : index
    %c0_78 = arith.constant 0 : index
    %330 = vector.load %arg2[%329, %c0_77, %c0_78] : memref<24x2x32xf32, #tpu.memory_space<vmem>>, vector<1x2x32xf32>
    %331 = vector.shape_cast %330 : vector<1x2x32xf32> to vector<2x32xf32>
    %332 = vector.shape_cast %328 : vector<2x32xf32> to vector<1x2x32xf32>
    tpu.vector_store %arg2[%329, %c0_77, %c0_78], %332 {strides = array<i32>} : memref<24x2x32xf32, #tpu.memory_space<vmem>>, vector<1x2x32xf32>,
    %c13_i32 = arith.constant 13 : i32
    %333 = arith.index_cast %c13_i32 : i32 to index
    %c0_79 = arith.constant 0 : index
    %c0_80 = arith.constant 0 : index
    %334 = vector.load %arg0[%333, %c0_79, %c0_80] : memref<24x2x128xf32, #tpu.memory_space<vmem>>, vector<1x2x128xf32>
    %335 = vector.shape_cast %334 : vector<1x2x128xf32> to vector<2x128xf32>
    %cst_81 = arith.constant dense<0.000000e+00> : vector<2x128xf32>
    %336 = tpu.matmul %328, %0, %cst_81 {dimension_numbers = #tpu.dot_dimension_numbers<[1], [0], [0], [1], [0, 0, 1, 1], [], []>} : vector<2x32xf32>, vector<32x128xf32>, vector<2x128xf32> -> vector<2x128xf32>
    %337 = arith.addf %335, %336 : vector<2x128xf32>
    %338 = math.tanh %337 : vector<2x128xf32>
    %339 = arith.negf %337 : vector<2x128xf32>
    %340 = math.exp %339 : vector<2x128xf32>
    %cst_82 = arith.constant 1.000000e+00 : f32
    %341 = vector.broadcast %cst_82 : f32 to vector<2x128xf32>
    %342 = arith.addf %341, %340 : vector<2x128xf32>
    %343 = arith.divf %341, %342 : vector<2x128xf32>
    %344 = arith.select %6, %338, %343 : vector<2x128xi1>, vector<2x128xf32>
    %345 = vector.extract_strided_slice %344 {offsets = [0, 0], sizes = [2, 32], strides = [1, 1]} : vector<2x128xf32> to vector<2x32xf32>
    %346 = vector.extract_strided_slice %344 {offsets = [0, 32], sizes = [2, 32], strides = [1, 1]} : vector<2x128xf32> to vector<2x32xf32>
    %347 = vector.extract_strided_slice %344 {offsets = [0, 64], sizes = [2, 32], strides = [1, 1]} : vector<2x128xf32> to vector<2x32xf32>
    %348 = vector.extract_strided_slice %344 {offsets = [0, 96], sizes = [2, 32], strides = [1, 1]} : vector<2x128xf32> to vector<2x32xf32>
    %349 = arith.mulf %346, %326 : vector<2x32xf32>
    %350 = arith.mulf %345, %347 : vector<2x32xf32>
    %351 = arith.addf %349, %350 : vector<2x32xf32>
    %352 = math.tanh %351 : vector<2x32xf32>
    %353 = arith.mulf %348, %352 : vector<2x32xf32>
    %354 = arith.index_cast %c13_i32 : i32 to index
    %c0_83 = arith.constant 0 : index
    %c0_84 = arith.constant 0 : index
    %355 = vector.load %arg2[%354, %c0_83, %c0_84] : memref<24x2x32xf32, #tpu.memory_space<vmem>>, vector<1x2x32xf32>
    %356 = vector.shape_cast %355 : vector<1x2x32xf32> to vector<2x32xf32>
    %357 = vector.shape_cast %353 : vector<2x32xf32> to vector<1x2x32xf32>
    tpu.vector_store %arg2[%354, %c0_83, %c0_84], %357 {strides = array<i32>} : memref<24x2x32xf32, #tpu.memory_space<vmem>>, vector<1x2x32xf32>,
    %c14_i32 = arith.constant 14 : i32
    %358 = arith.index_cast %c14_i32 : i32 to index
    %c0_85 = arith.constant 0 : index
    %c0_86 = arith.constant 0 : index
    %359 = vector.load %arg0[%358, %c0_85, %c0_86] : memref<24x2x128xf32, #tpu.memory_space<vmem>>, vector<1x2x128xf32>
    %360 = vector.shape_cast %359 : vector<1x2x128xf32> to vector<2x128xf32>
    %cst_87 = arith.constant dense<0.000000e+00> : vector<2x128xf32>
    %361 = tpu.matmul %353, %0, %cst_87 {dimension_numbers = #tpu.dot_dimension_numbers<[1], [0], [0], [1], [0, 0, 1, 1], [], []>} : vector<2x32xf32>, vector<32x128xf32>, vector<2x128xf32> -> vector<2x128xf32>
    %362 = arith.addf %360, %361 : vector<2x128xf32>
    %363 = math.tanh %362 : vector<2x128xf32>
    %364 = arith.negf %362 : vector<2x128xf32>
    %365 = math.exp %364 : vector<2x128xf32>
    %cst_88 = arith.constant 1.000000e+00 : f32
    %366 = vector.broadcast %cst_88 : f32 to vector<2x128xf32>
    %367 = arith.addf %366, %365 : vector<2x128xf32>
    %368 = arith.divf %366, %367 : vector<2x128xf32>
    %369 = arith.select %6, %363, %368 : vector<2x128xi1>, vector<2x128xf32>
    %370 = vector.extract_strided_slice %369 {offsets = [0, 0], sizes = [2, 32], strides = [1, 1]} : vector<2x128xf32> to vector<2x32xf32>
    %371 = vector.extract_strided_slice %369 {offsets = [0, 32], sizes = [2, 32], strides = [1, 1]} : vector<2x128xf32> to vector<2x32xf32>
    %372 = vector.extract_strided_slice %369 {offsets = [0, 64], sizes = [2, 32], strides = [1, 1]} : vector<2x128xf32> to vector<2x32xf32>
    %373 = vector.extract_strided_slice %369 {offsets = [0, 96], sizes = [2, 32], strides = [1, 1]} : vector<2x128xf32> to vector<2x32xf32>
    %374 = arith.mulf %371, %351 : vector<2x32xf32>
    %375 = arith.mulf %370, %372 : vector<2x32xf32>
    %376 = arith.addf %374, %375 : vector<2x32xf32>
    %377 = math.tanh %376 : vector<2x32xf32>
    %378 = arith.mulf %373, %377 : vector<2x32xf32>
    %379 = arith.index_cast %c14_i32 : i32 to index
    %c0_89 = arith.constant 0 : index
    %c0_90 = arith.constant 0 : index
    %380 = vector.load %arg2[%379, %c0_89, %c0_90] : memref<24x2x32xf32, #tpu.memory_space<vmem>>, vector<1x2x32xf32>
    %381 = vector.shape_cast %380 : vector<1x2x32xf32> to vector<2x32xf32>
    %382 = vector.shape_cast %378 : vector<2x32xf32> to vector<1x2x32xf32>
    tpu.vector_store %arg2[%379, %c0_89, %c0_90], %382 {strides = array<i32>} : memref<24x2x32xf32, #tpu.memory_space<vmem>>, vector<1x2x32xf32>,
    %c15_i32 = arith.constant 15 : i32
    %383 = arith.index_cast %c15_i32 : i32 to index
    %c0_91 = arith.constant 0 : index
    %c0_92 = arith.constant 0 : index
    %384 = vector.load %arg0[%383, %c0_91, %c0_92] : memref<24x2x128xf32, #tpu.memory_space<vmem>>, vector<1x2x128xf32>
    %385 = vector.shape_cast %384 : vector<1x2x128xf32> to vector<2x128xf32>
    %cst_93 = arith.constant dense<0.000000e+00> : vector<2x128xf32>
    %386 = tpu.matmul %378, %0, %cst_93 {dimension_numbers = #tpu.dot_dimension_numbers<[1], [0], [0], [1], [0, 0, 1, 1], [], []>} : vector<2x32xf32>, vector<32x128xf32>, vector<2x128xf32> -> vector<2x128xf32>
    %387 = arith.addf %385, %386 : vector<2x128xf32>
    %388 = math.tanh %387 : vector<2x128xf32>
    %389 = arith.negf %387 : vector<2x128xf32>
    %390 = math.exp %389 : vector<2x128xf32>
    %cst_94 = arith.constant 1.000000e+00 : f32
    %391 = vector.broadcast %cst_94 : f32 to vector<2x128xf32>
    %392 = arith.addf %391, %390 : vector<2x128xf32>
    %393 = arith.divf %391, %392 : vector<2x128xf32>
    %394 = arith.select %6, %388, %393 : vector<2x128xi1>, vector<2x128xf32>
    %395 = vector.extract_strided_slice %394 {offsets = [0, 0], sizes = [2, 32], strides = [1, 1]} : vector<2x128xf32> to vector<2x32xf32>
    %396 = vector.extract_strided_slice %394 {offsets = [0, 32], sizes = [2, 32], strides = [1, 1]} : vector<2x128xf32> to vector<2x32xf32>
    %397 = vector.extract_strided_slice %394 {offsets = [0, 64], sizes = [2, 32], strides = [1, 1]} : vector<2x128xf32> to vector<2x32xf32>
    %398 = vector.extract_strided_slice %394 {offsets = [0, 96], sizes = [2, 32], strides = [1, 1]} : vector<2x128xf32> to vector<2x32xf32>
    %399 = arith.mulf %396, %376 : vector<2x32xf32>
    %400 = arith.mulf %395, %397 : vector<2x32xf32>
    %401 = arith.addf %399, %400 : vector<2x32xf32>
    %402 = math.tanh %401 : vector<2x32xf32>
    %403 = arith.mulf %398, %402 : vector<2x32xf32>
    %404 = arith.index_cast %c15_i32 : i32 to index
    %c0_95 = arith.constant 0 : index
    %c0_96 = arith.constant 0 : index
    %405 = vector.load %arg2[%404, %c0_95, %c0_96] : memref<24x2x32xf32, #tpu.memory_space<vmem>>, vector<1x2x32xf32>
    %406 = vector.shape_cast %405 : vector<1x2x32xf32> to vector<2x32xf32>
    %407 = vector.shape_cast %403 : vector<2x32xf32> to vector<1x2x32xf32>
    tpu.vector_store %arg2[%404, %c0_95, %c0_96], %407 {strides = array<i32>} : memref<24x2x32xf32, #tpu.memory_space<vmem>>, vector<1x2x32xf32>,
    %c16_i32 = arith.constant 16 : i32
    %408 = arith.index_cast %c16_i32 : i32 to index
    %c0_97 = arith.constant 0 : index
    %c0_98 = arith.constant 0 : index
    %409 = vector.load %arg0[%408, %c0_97, %c0_98] : memref<24x2x128xf32, #tpu.memory_space<vmem>>, vector<1x2x128xf32>
    %410 = vector.shape_cast %409 : vector<1x2x128xf32> to vector<2x128xf32>
    %cst_99 = arith.constant dense<0.000000e+00> : vector<2x128xf32>
    %411 = tpu.matmul %403, %0, %cst_99 {dimension_numbers = #tpu.dot_dimension_numbers<[1], [0], [0], [1], [0, 0, 1, 1], [], []>} : vector<2x32xf32>, vector<32x128xf32>, vector<2x128xf32> -> vector<2x128xf32>
    %412 = arith.addf %410, %411 : vector<2x128xf32>
    %413 = math.tanh %412 : vector<2x128xf32>
    %414 = arith.negf %412 : vector<2x128xf32>
    %415 = math.exp %414 : vector<2x128xf32>
    %cst_100 = arith.constant 1.000000e+00 : f32
    %416 = vector.broadcast %cst_100 : f32 to vector<2x128xf32>
    %417 = arith.addf %416, %415 : vector<2x128xf32>
    %418 = arith.divf %416, %417 : vector<2x128xf32>
    %419 = arith.select %6, %413, %418 : vector<2x128xi1>, vector<2x128xf32>
    %420 = vector.extract_strided_slice %419 {offsets = [0, 0], sizes = [2, 32], strides = [1, 1]} : vector<2x128xf32> to vector<2x32xf32>
    %421 = vector.extract_strided_slice %419 {offsets = [0, 32], sizes = [2, 32], strides = [1, 1]} : vector<2x128xf32> to vector<2x32xf32>
    %422 = vector.extract_strided_slice %419 {offsets = [0, 64], sizes = [2, 32], strides = [1, 1]} : vector<2x128xf32> to vector<2x32xf32>
    %423 = vector.extract_strided_slice %419 {offsets = [0, 96], sizes = [2, 32], strides = [1, 1]} : vector<2x128xf32> to vector<2x32xf32>
    %424 = arith.mulf %421, %401 : vector<2x32xf32>
    %425 = arith.mulf %420, %422 : vector<2x32xf32>
    %426 = arith.addf %424, %425 : vector<2x32xf32>
    %427 = math.tanh %426 : vector<2x32xf32>
    %428 = arith.mulf %423, %427 : vector<2x32xf32>
    %429 = arith.index_cast %c16_i32 : i32 to index
    %c0_101 = arith.constant 0 : index
    %c0_102 = arith.constant 0 : index
    %430 = vector.load %arg2[%429, %c0_101, %c0_102] : memref<24x2x32xf32, #tpu.memory_space<vmem>>, vector<1x2x32xf32>
    %431 = vector.shape_cast %430 : vector<1x2x32xf32> to vector<2x32xf32>
    %432 = vector.shape_cast %428 : vector<2x32xf32> to vector<1x2x32xf32>
    tpu.vector_store %arg2[%429, %c0_101, %c0_102], %432 {strides = array<i32>} : memref<24x2x32xf32, #tpu.memory_space<vmem>>, vector<1x2x32xf32>,
    %c17_i32 = arith.constant 17 : i32
    %433 = arith.index_cast %c17_i32 : i32 to index
    %c0_103 = arith.constant 0 : index
    %c0_104 = arith.constant 0 : index
    %434 = vector.load %arg0[%433, %c0_103, %c0_104] : memref<24x2x128xf32, #tpu.memory_space<vmem>>, vector<1x2x128xf32>
    %435 = vector.shape_cast %434 : vector<1x2x128xf32> to vector<2x128xf32>
    %cst_105 = arith.constant dense<0.000000e+00> : vector<2x128xf32>
    %436 = tpu.matmul %428, %0, %cst_105 {dimension_numbers = #tpu.dot_dimension_numbers<[1], [0], [0], [1], [0, 0, 1, 1], [], []>} : vector<2x32xf32>, vector<32x128xf32>, vector<2x128xf32> -> vector<2x128xf32>
    %437 = arith.addf %435, %436 : vector<2x128xf32>
    %438 = math.tanh %437 : vector<2x128xf32>
    %439 = arith.negf %437 : vector<2x128xf32>
    %440 = math.exp %439 : vector<2x128xf32>
    %cst_106 = arith.constant 1.000000e+00 : f32
    %441 = vector.broadcast %cst_106 : f32 to vector<2x128xf32>
    %442 = arith.addf %441, %440 : vector<2x128xf32>
    %443 = arith.divf %441, %442 : vector<2x128xf32>
    %444 = arith.select %6, %438, %443 : vector<2x128xi1>, vector<2x128xf32>
    %445 = vector.extract_strided_slice %444 {offsets = [0, 0], sizes = [2, 32], strides = [1, 1]} : vector<2x128xf32> to vector<2x32xf32>
    %446 = vector.extract_strided_slice %444 {offsets = [0, 32], sizes = [2, 32], strides = [1, 1]} : vector<2x128xf32> to vector<2x32xf32>
    %447 = vector.extract_strided_slice %444 {offsets = [0, 64], sizes = [2, 32], strides = [1, 1]} : vector<2x128xf32> to vector<2x32xf32>
    %448 = vector.extract_strided_slice %444 {offsets = [0, 96], sizes = [2, 32], strides = [1, 1]} : vector<2x128xf32> to vector<2x32xf32>
    %449 = arith.mulf %446, %426 : vector<2x32xf32>
    %450 = arith.mulf %445, %447 : vector<2x32xf32>
    %451 = arith.addf %449, %450 : vector<2x32xf32>
    %452 = math.tanh %451 : vector<2x32xf32>
    %453 = arith.mulf %448, %452 : vector<2x32xf32>
    %454 = arith.index_cast %c17_i32 : i32 to index
    %c0_107 = arith.constant 0 : index
    %c0_108 = arith.constant 0 : index
    %455 = vector.load %arg2[%454, %c0_107, %c0_108] : memref<24x2x32xf32, #tpu.memory_space<vmem>>, vector<1x2x32xf32>
    %456 = vector.shape_cast %455 : vector<1x2x32xf32> to vector<2x32xf32>
    %457 = vector.shape_cast %453 : vector<2x32xf32> to vector<1x2x32xf32>
    tpu.vector_store %arg2[%454, %c0_107, %c0_108], %457 {strides = array<i32>} : memref<24x2x32xf32, #tpu.memory_space<vmem>>, vector<1x2x32xf32>,
    %c18_i32 = arith.constant 18 : i32
    %458 = arith.index_cast %c18_i32 : i32 to index
    %c0_109 = arith.constant 0 : index
    %c0_110 = arith.constant 0 : index
    %459 = vector.load %arg0[%458, %c0_109, %c0_110] : memref<24x2x128xf32, #tpu.memory_space<vmem>>, vector<1x2x128xf32>
    %460 = vector.shape_cast %459 : vector<1x2x128xf32> to vector<2x128xf32>
    %cst_111 = arith.constant dense<0.000000e+00> : vector<2x128xf32>
    %461 = tpu.matmul %453, %0, %cst_111 {dimension_numbers = #tpu.dot_dimension_numbers<[1], [0], [0], [1], [0, 0, 1, 1], [], []>} : vector<2x32xf32>, vector<32x128xf32>, vector<2x128xf32> -> vector<2x128xf32>
    %462 = arith.addf %460, %461 : vector<2x128xf32>
    %463 = math.tanh %462 : vector<2x128xf32>
    %464 = arith.negf %462 : vector<2x128xf32>
    %465 = math.exp %464 : vector<2x128xf32>
    %cst_112 = arith.constant 1.000000e+00 : f32
    %466 = vector.broadcast %cst_112 : f32 to vector<2x128xf32>
    %467 = arith.addf %466, %465 : vector<2x128xf32>
    %468 = arith.divf %466, %467 : vector<2x128xf32>
    %469 = arith.select %6, %463, %468 : vector<2x128xi1>, vector<2x128xf32>
    %470 = vector.extract_strided_slice %469 {offsets = [0, 0], sizes = [2, 32], strides = [1, 1]} : vector<2x128xf32> to vector<2x32xf32>
    %471 = vector.extract_strided_slice %469 {offsets = [0, 32], sizes = [2, 32], strides = [1, 1]} : vector<2x128xf32> to vector<2x32xf32>
    %472 = vector.extract_strided_slice %469 {offsets = [0, 64], sizes = [2, 32], strides = [1, 1]} : vector<2x128xf32> to vector<2x32xf32>
    %473 = vector.extract_strided_slice %469 {offsets = [0, 96], sizes = [2, 32], strides = [1, 1]} : vector<2x128xf32> to vector<2x32xf32>
    %474 = arith.mulf %471, %451 : vector<2x32xf32>
    %475 = arith.mulf %470, %472 : vector<2x32xf32>
    %476 = arith.addf %474, %475 : vector<2x32xf32>
    %477 = math.tanh %476 : vector<2x32xf32>
    %478 = arith.mulf %473, %477 : vector<2x32xf32>
    %479 = arith.index_cast %c18_i32 : i32 to index
    %c0_113 = arith.constant 0 : index
    %c0_114 = arith.constant 0 : index
    %480 = vector.load %arg2[%479, %c0_113, %c0_114] : memref<24x2x32xf32, #tpu.memory_space<vmem>>, vector<1x2x32xf32>
    %481 = vector.shape_cast %480 : vector<1x2x32xf32> to vector<2x32xf32>
    %482 = vector.shape_cast %478 : vector<2x32xf32> to vector<1x2x32xf32>
    tpu.vector_store %arg2[%479, %c0_113, %c0_114], %482 {strides = array<i32>} : memref<24x2x32xf32, #tpu.memory_space<vmem>>, vector<1x2x32xf32>,
    %c19_i32 = arith.constant 19 : i32
    %483 = arith.index_cast %c19_i32 : i32 to index
    %c0_115 = arith.constant 0 : index
    %c0_116 = arith.constant 0 : index
    %484 = vector.load %arg0[%483, %c0_115, %c0_116] : memref<24x2x128xf32, #tpu.memory_space<vmem>>, vector<1x2x128xf32>
    %485 = vector.shape_cast %484 : vector<1x2x128xf32> to vector<2x128xf32>
    %cst_117 = arith.constant dense<0.000000e+00> : vector<2x128xf32>
    %486 = tpu.matmul %478, %0, %cst_117 {dimension_numbers = #tpu.dot_dimension_numbers<[1], [0], [0], [1], [0, 0, 1, 1], [], []>} : vector<2x32xf32>, vector<32x128xf32>, vector<2x128xf32> -> vector<2x128xf32>
    %487 = arith.addf %485, %486 : vector<2x128xf32>
    %488 = math.tanh %487 : vector<2x128xf32>
    %489 = arith.negf %487 : vector<2x128xf32>
    %490 = math.exp %489 : vector<2x128xf32>
    %cst_118 = arith.constant 1.000000e+00 : f32
    %491 = vector.broadcast %cst_118 : f32 to vector<2x128xf32>
    %492 = arith.addf %491, %490 : vector<2x128xf32>
    %493 = arith.divf %491, %492 : vector<2x128xf32>
    %494 = arith.select %6, %488, %493 : vector<2x128xi1>, vector<2x128xf32>
    %495 = vector.extract_strided_slice %494 {offsets = [0, 0], sizes = [2, 32], strides = [1, 1]} : vector<2x128xf32> to vector<2x32xf32>
    %496 = vector.extract_strided_slice %494 {offsets = [0, 32], sizes = [2, 32], strides = [1, 1]} : vector<2x128xf32> to vector<2x32xf32>
    %497 = vector.extract_strided_slice %494 {offsets = [0, 64], sizes = [2, 32], strides = [1, 1]} : vector<2x128xf32> to vector<2x32xf32>
    %498 = vector.extract_strided_slice %494 {offsets = [0, 96], sizes = [2, 32], strides = [1, 1]} : vector<2x128xf32> to vector<2x32xf32>
    %499 = arith.mulf %496, %476 : vector<2x32xf32>
    %500 = arith.mulf %495, %497 : vector<2x32xf32>
    %501 = arith.addf %499, %500 : vector<2x32xf32>
    %502 = math.tanh %501 : vector<2x32xf32>
    %503 = arith.mulf %498, %502 : vector<2x32xf32>
    %504 = arith.index_cast %c19_i32 : i32 to index
    %c0_119 = arith.constant 0 : index
    %c0_120 = arith.constant 0 : index
    %505 = vector.load %arg2[%504, %c0_119, %c0_120] : memref<24x2x32xf32, #tpu.memory_space<vmem>>, vector<1x2x32xf32>
    %506 = vector.shape_cast %505 : vector<1x2x32xf32> to vector<2x32xf32>
    %507 = vector.shape_cast %503 : vector<2x32xf32> to vector<1x2x32xf32>
    tpu.vector_store %arg2[%504, %c0_119, %c0_120], %507 {strides = array<i32>} : memref<24x2x32xf32, #tpu.memory_space<vmem>>, vector<1x2x32xf32>,
    %c20_i32 = arith.constant 20 : i32
    %508 = arith.index_cast %c20_i32 : i32 to index
    %c0_121 = arith.constant 0 : index
    %c0_122 = arith.constant 0 : index
    %509 = vector.load %arg0[%508, %c0_121, %c0_122] : memref<24x2x128xf32, #tpu.memory_space<vmem>>, vector<1x2x128xf32>
    %510 = vector.shape_cast %509 : vector<1x2x128xf32> to vector<2x128xf32>
    %cst_123 = arith.constant dense<0.000000e+00> : vector<2x128xf32>
    %511 = tpu.matmul %503, %0, %cst_123 {dimension_numbers = #tpu.dot_dimension_numbers<[1], [0], [0], [1], [0, 0, 1, 1], [], []>} : vector<2x32xf32>, vector<32x128xf32>, vector<2x128xf32> -> vector<2x128xf32>
    %512 = arith.addf %510, %511 : vector<2x128xf32>
    %513 = math.tanh %512 : vector<2x128xf32>
    %514 = arith.negf %512 : vector<2x128xf32>
    %515 = math.exp %514 : vector<2x128xf32>
    %cst_124 = arith.constant 1.000000e+00 : f32
    %516 = vector.broadcast %cst_124 : f32 to vector<2x128xf32>
    %517 = arith.addf %516, %515 : vector<2x128xf32>
    %518 = arith.divf %516, %517 : vector<2x128xf32>
    %519 = arith.select %6, %513, %518 : vector<2x128xi1>, vector<2x128xf32>
    %520 = vector.extract_strided_slice %519 {offsets = [0, 0], sizes = [2, 32], strides = [1, 1]} : vector<2x128xf32> to vector<2x32xf32>
    %521 = vector.extract_strided_slice %519 {offsets = [0, 32], sizes = [2, 32], strides = [1, 1]} : vector<2x128xf32> to vector<2x32xf32>
    %522 = vector.extract_strided_slice %519 {offsets = [0, 64], sizes = [2, 32], strides = [1, 1]} : vector<2x128xf32> to vector<2x32xf32>
    %523 = vector.extract_strided_slice %519 {offsets = [0, 96], sizes = [2, 32], strides = [1, 1]} : vector<2x128xf32> to vector<2x32xf32>
    %524 = arith.mulf %521, %501 : vector<2x32xf32>
    %525 = arith.mulf %520, %522 : vector<2x32xf32>
    %526 = arith.addf %524, %525 : vector<2x32xf32>
    %527 = math.tanh %526 : vector<2x32xf32>
    %528 = arith.mulf %523, %527 : vector<2x32xf32>
    %529 = arith.index_cast %c20_i32 : i32 to index
    %c0_125 = arith.constant 0 : index
    %c0_126 = arith.constant 0 : index
    %530 = vector.load %arg2[%529, %c0_125, %c0_126] : memref<24x2x32xf32, #tpu.memory_space<vmem>>, vector<1x2x32xf32>
    %531 = vector.shape_cast %530 : vector<1x2x32xf32> to vector<2x32xf32>
    %532 = vector.shape_cast %528 : vector<2x32xf32> to vector<1x2x32xf32>
    tpu.vector_store %arg2[%529, %c0_125, %c0_126], %532 {strides = array<i32>} : memref<24x2x32xf32, #tpu.memory_space<vmem>>, vector<1x2x32xf32>,
    %c21_i32 = arith.constant 21 : i32
    %533 = arith.index_cast %c21_i32 : i32 to index
    %c0_127 = arith.constant 0 : index
    %c0_128 = arith.constant 0 : index
    %534 = vector.load %arg0[%533, %c0_127, %c0_128] : memref<24x2x128xf32, #tpu.memory_space<vmem>>, vector<1x2x128xf32>
    %535 = vector.shape_cast %534 : vector<1x2x128xf32> to vector<2x128xf32>
    %cst_129 = arith.constant dense<0.000000e+00> : vector<2x128xf32>
    %536 = tpu.matmul %528, %0, %cst_129 {dimension_numbers = #tpu.dot_dimension_numbers<[1], [0], [0], [1], [0, 0, 1, 1], [], []>} : vector<2x32xf32>, vector<32x128xf32>, vector<2x128xf32> -> vector<2x128xf32>
    %537 = arith.addf %535, %536 : vector<2x128xf32>
    %538 = math.tanh %537 : vector<2x128xf32>
    %539 = arith.negf %537 : vector<2x128xf32>
    %540 = math.exp %539 : vector<2x128xf32>
    %cst_130 = arith.constant 1.000000e+00 : f32
    %541 = vector.broadcast %cst_130 : f32 to vector<2x128xf32>
    %542 = arith.addf %541, %540 : vector<2x128xf32>
    %543 = arith.divf %541, %542 : vector<2x128xf32>
    %544 = arith.select %6, %538, %543 : vector<2x128xi1>, vector<2x128xf32>
    %545 = vector.extract_strided_slice %544 {offsets = [0, 0], sizes = [2, 32], strides = [1, 1]} : vector<2x128xf32> to vector<2x32xf32>
    %546 = vector.extract_strided_slice %544 {offsets = [0, 32], sizes = [2, 32], strides = [1, 1]} : vector<2x128xf32> to vector<2x32xf32>
    %547 = vector.extract_strided_slice %544 {offsets = [0, 64], sizes = [2, 32], strides = [1, 1]} : vector<2x128xf32> to vector<2x32xf32>
    %548 = vector.extract_strided_slice %544 {offsets = [0, 96], sizes = [2, 32], strides = [1, 1]} : vector<2x128xf32> to vector<2x32xf32>
    %549 = arith.mulf %546, %526 : vector<2x32xf32>
    %550 = arith.mulf %545, %547 : vector<2x32xf32>
    %551 = arith.addf %549, %550 : vector<2x32xf32>
    %552 = math.tanh %551 : vector<2x32xf32>
    %553 = arith.mulf %548, %552 : vector<2x32xf32>
    %554 = arith.index_cast %c21_i32 : i32 to index
    %c0_131 = arith.constant 0 : index
    %c0_132 = arith.constant 0 : index
    %555 = vector.load %arg2[%554, %c0_131, %c0_132] : memref<24x2x32xf32, #tpu.memory_space<vmem>>, vector<1x2x32xf32>
    %556 = vector.shape_cast %555 : vector<1x2x32xf32> to vector<2x32xf32>
    %557 = vector.shape_cast %553 : vector<2x32xf32> to vector<1x2x32xf32>
    tpu.vector_store %arg2[%554, %c0_131, %c0_132], %557 {strides = array<i32>} : memref<24x2x32xf32, #tpu.memory_space<vmem>>, vector<1x2x32xf32>,
    %c22_i32 = arith.constant 22 : i32
    %558 = arith.index_cast %c22_i32 : i32 to index
    %c0_133 = arith.constant 0 : index
    %c0_134 = arith.constant 0 : index
    %559 = vector.load %arg0[%558, %c0_133, %c0_134] : memref<24x2x128xf32, #tpu.memory_space<vmem>>, vector<1x2x128xf32>
    %560 = vector.shape_cast %559 : vector<1x2x128xf32> to vector<2x128xf32>
    %cst_135 = arith.constant dense<0.000000e+00> : vector<2x128xf32>
    %561 = tpu.matmul %553, %0, %cst_135 {dimension_numbers = #tpu.dot_dimension_numbers<[1], [0], [0], [1], [0, 0, 1, 1], [], []>} : vector<2x32xf32>, vector<32x128xf32>, vector<2x128xf32> -> vector<2x128xf32>
    %562 = arith.addf %560, %561 : vector<2x128xf32>
    %563 = math.tanh %562 : vector<2x128xf32>
    %564 = arith.negf %562 : vector<2x128xf32>
    %565 = math.exp %564 : vector<2x128xf32>
    %cst_136 = arith.constant 1.000000e+00 : f32
    %566 = vector.broadcast %cst_136 : f32 to vector<2x128xf32>
    %567 = arith.addf %566, %565 : vector<2x128xf32>
    %568 = arith.divf %566, %567 : vector<2x128xf32>
    %569 = arith.select %6, %563, %568 : vector<2x128xi1>, vector<2x128xf32>
    %570 = vector.extract_strided_slice %569 {offsets = [0, 0], sizes = [2, 32], strides = [1, 1]} : vector<2x128xf32> to vector<2x32xf32>
    %571 = vector.extract_strided_slice %569 {offsets = [0, 32], sizes = [2, 32], strides = [1, 1]} : vector<2x128xf32> to vector<2x32xf32>
    %572 = vector.extract_strided_slice %569 {offsets = [0, 64], sizes = [2, 32], strides = [1, 1]} : vector<2x128xf32> to vector<2x32xf32>
    %573 = vector.extract_strided_slice %569 {offsets = [0, 96], sizes = [2, 32], strides = [1, 1]} : vector<2x128xf32> to vector<2x32xf32>
    %574 = arith.mulf %571, %551 : vector<2x32xf32>
    %575 = arith.mulf %570, %572 : vector<2x32xf32>
    %576 = arith.addf %574, %575 : vector<2x32xf32>
    %577 = math.tanh %576 : vector<2x32xf32>
    %578 = arith.mulf %573, %577 : vector<2x32xf32>
    %579 = arith.index_cast %c22_i32 : i32 to index
    %c0_137 = arith.constant 0 : index
    %c0_138 = arith.constant 0 : index
    %580 = vector.load %arg2[%579, %c0_137, %c0_138] : memref<24x2x32xf32, #tpu.memory_space<vmem>>, vector<1x2x32xf32>
    %581 = vector.shape_cast %580 : vector<1x2x32xf32> to vector<2x32xf32>
    %582 = vector.shape_cast %578 : vector<2x32xf32> to vector<1x2x32xf32>
    tpu.vector_store %arg2[%579, %c0_137, %c0_138], %582 {strides = array<i32>} : memref<24x2x32xf32, #tpu.memory_space<vmem>>, vector<1x2x32xf32>,
    %c23_i32 = arith.constant 23 : i32
    %583 = arith.index_cast %c23_i32 : i32 to index
    %c0_139 = arith.constant 0 : index
    %c0_140 = arith.constant 0 : index
    %584 = vector.load %arg0[%583, %c0_139, %c0_140] : memref<24x2x128xf32, #tpu.memory_space<vmem>>, vector<1x2x128xf32>
    %585 = vector.shape_cast %584 : vector<1x2x128xf32> to vector<2x128xf32>
    %cst_141 = arith.constant dense<0.000000e+00> : vector<2x128xf32>
    %586 = tpu.matmul %578, %0, %cst_141 {dimension_numbers = #tpu.dot_dimension_numbers<[1], [0], [0], [1], [0, 0, 1, 1], [], []>} : vector<2x32xf32>, vector<32x128xf32>, vector<2x128xf32> -> vector<2x128xf32>
    %587 = arith.addf %585, %586 : vector<2x128xf32>
    %588 = math.tanh %587 : vector<2x128xf32>
    %589 = arith.negf %587 : vector<2x128xf32>
    %590 = math.exp %589 : vector<2x128xf32>
    %cst_142 = arith.constant 1.000000e+00 : f32
    %591 = vector.broadcast %cst_142 : f32 to vector<2x128xf32>
    %592 = arith.addf %591, %590 : vector<2x128xf32>
    %593 = arith.divf %591, %592 : vector<2x128xf32>
    %594 = arith.select %6, %588, %593 : vector<2x128xi1>, vector<2x128xf32>
    %595 = vector.extract_strided_slice %594 {offsets = [0, 0], sizes = [2, 32], strides = [1, 1]} : vector<2x128xf32> to vector<2x32xf32>
    %596 = vector.extract_strided_slice %594 {offsets = [0, 32], sizes = [2, 32], strides = [1, 1]} : vector<2x128xf32> to vector<2x32xf32>
    %597 = vector.extract_strided_slice %594 {offsets = [0, 64], sizes = [2, 32], strides = [1, 1]} : vector<2x128xf32> to vector<2x32xf32>
    %598 = vector.extract_strided_slice %594 {offsets = [0, 96], sizes = [2, 32], strides = [1, 1]} : vector<2x128xf32> to vector<2x32xf32>
    %599 = arith.mulf %596, %576 : vector<2x32xf32>
    %600 = arith.mulf %595, %597 : vector<2x32xf32>
    %601 = arith.addf %599, %600 : vector<2x32xf32>
    %602 = math.tanh %601 : vector<2x32xf32>
    %603 = arith.mulf %598, %602 : vector<2x32xf32>
    %604 = arith.index_cast %c23_i32 : i32 to index
    %c0_143 = arith.constant 0 : index
    %c0_144 = arith.constant 0 : index
    %605 = vector.load %arg2[%604, %c0_143, %c0_144] : memref<24x2x32xf32, #tpu.memory_space<vmem>>, vector<1x2x32xf32>
    %606 = vector.shape_cast %605 : vector<1x2x32xf32> to vector<2x32xf32>
    %607 = vector.shape_cast %603 : vector<2x32xf32> to vector<1x2x32xf32>
    tpu.vector_store %arg2[%604, %c0_143, %c0_144], %607 {strides = array<i32>} : memref<24x2x32xf32, #tpu.memory_space<vmem>>, vector<1x2x32xf32>,
    %c24_i32 = arith.constant 24 : i32
    return
  }
}

</mosaic_0001>

<bundles_post_ra>
// kernel: lstm_forward.1
= control target key start
LH: loop header
LB: loop body
LE: loop exit
PB: predicated region body
PF: predicated region fallthrough
CT: control target
= control target key end

     0   :  { %v3387_v0 = vmov 0.0|0.0   ;;  %vm3388_vm0 = vmmov 0   ;;  %v3389_v4 = vmov 0.0   ;;  %v15_v14 = vlaneseq  ;;  %s3390_s18 = smov 64   ;;  %s3391_s19 = smov 32   ;;  %s3907_s1 = inlined_call_operand.vmem [shape: f32[32,128], index: 1, kind: input, shape index: {}]   ;;  %s3908_s0 = inlined_call_operand.vmem [shape: f32[24,2,128], index: 0, kind: input, shape index: {}]   ;;  %s3909_s2 = inlined_call_operand.vmem [shape: f32[24,2,32], index: 2, kind: output, shape index: {}]  }
   0x1   :  { %3046 = vmatprep.subr.bf16.mxu0 %v3387_v0  ;;  %v11_v1 = vld [vmem:[%s3907_s1] sm:$0xff]  ;;  %v12_v2 = vld [vmem:[%s3907_s1 + $0x8] sm:$0xff]  ;;  %v13_v3 = vld [vmem:[%s3907_s1 + $0x10] sm:$0xff]  ;;  %2790 = vmatprep.mubr.msk.f32.mxu0 %vm3388_vm0, %v3389_v4  ;;  %vm125_vm4 = vcmask 254976   ;;  %vm21_vm5 = vcmask 261120  }
   0x2   :  { %v3419_v5 = vpack.c.bf16 %v12_v2, %v11_v1  ;;  %v14_v6 = vld [vmem:[%s3907_s1 + $0x18] sm:$0xff]  ;;  %3052 = vmatprep.subr.bf16.mxu1 %v3387_v0  ;;  %2801 = vmatprep.mubr.msk.f32.mxu1 %vm3388_vm0, %v3389_v4  ;;  %v20_v8 = vld [vmem:[%s3908_s0] sm:$0x3]  ;;  %v16_v16 = vand.u32 127, %v15_v14  ;;  %v2570_v30 = vld [vmem:[%s3908_s0 + $0x2] sm:$0x3] }
   0x3   :  { %v3428_v7 = vpack.c.bf16 %v14_v6, %v13_v3  ;;  %v2574_v49 = vld [vmem:[%s3908_s0 + $0x4] sm:$0x3] }
   0x4   :  { %3048 = vmatpush3.bf16.msra.mxu0 %v3419_v5  ;;  %3054 = vmatpush3.bf16.msra.mxu1 %v3419_v5  ;;  %vm17_vm1 = vcmp.ge.s32.totalorder %v16_v16, 64  ;;  %vm18_vm2 = vcmp.lt.s32.totalorder %v16_v16, 96 }
   0x5   :  { %3049 = vmatprep.subr.bf16.mxu0 %v3387_v0  ;;  %3055 = vmatprep.subr.bf16.mxu1 %v3387_v0  ;;  %vm3447_vm3 = vmand %vm17_vm1, %vm18_vm2 }
   0x8   :  { %3051 = vmatpush3.bf16.msra.mxu0 %v3428_v7  ;;  %3057 = vmatpush3.bf16.msra.mxu1 %v3428_v7 }
   0x9   :  { %3058 = vmatprep.subr.bf16.mxu0 %v3387_v0  ;;  %3064 = vmatprep.subr.bf16.mxu1 %v3387_v0 }
   0xb   :  { %2791 = vmatmul.mubr.f32.vlgmr.msra.gmra.mrb[0].mxu0 %v3389_v4 }
   0xc   :  { %3060 = vmatpush3.bf16.msra.mxu0 %v3419_v5  ;;  %2812 = vmatprep.mubr.msk.f32.mxu0 %vm3388_vm0, %v3389_v4 }
   0xd   :  { %3061 = vmatprep.subr.bf16.mxu0 %v3387_v0 }
  0x10   :  { %3063 = vmatpush3.bf16.msra.mxu0 %v3428_v7 }
  0x11   :  { %3070 = vmatprep.subr.bf16.mxu0 %v3387_v0 }
  0xde   :  { %v91_v9 = vpop.f32.mrb[0].mxu0 }
  0xdf   :  { %v95_v10 = vadd.f32 %v91_v9, %v20_v8  ;;  %v2792_v11 = vpop.f32.mrb[1].mxu0  ;;  %v2578_v8 = vld [vmem:[%s3908_s0 + $0x6] sm:$0x3] }
  0xe1   :  { %v2569_v12 = vmul.f32 -1.442695, %v95_v10 }
  0xe3   :  { %3195 = vpow2.f32 %v2569_v12 }
  0xe4   :  { %3197 = vtanh.f32 %v95_v10 }
  0xed   :  { %v3196_v13 = vpop.eup %3195 }
  0xee   :  { %v100_v15 = vadd.f32 1.0, %v3196_v13  ;;  %v3198_v18 = vpop.eup %3197 }
  0xf0   :  { %3199 = vrcp.f32 %v100_v15 }
  0xfa   :  { %v3200_v19 = vpop.eup %3199 }
  0xfb   :  { %v103_v20 = vsel %vm3447_vm3, %v3198_v18, %v3200_v19 }
  0xfc   :  { %106 = vrot.lane.b32.xlu0 %v103_v20, %s3390_s18  ;;  %v104_v23 = vmul.f32 0.0, %v103_v20 }
 0x16e   :  { %v107_v21 = vpop.permute.xlu0 %106 }
 0x16f   :  { %v109_v22 = vmul.f32 %v107_v21, %v103_v20 }
 0x171   :  { %111 = vrot.lane.b32.xlu0 %v109_v22, %s3391_s19 }
 0x1e3   :  { %v112_v24 = vpop.permute.xlu0 %111 }
 0x1e4   :  { %v114_v25 = vadd.f32 %v112_v24, %v104_v23 }
 0x1e6   :  { %3201 = vtanh.f32 %v114_v25 }
 0x1f0   :  { %v3202_v26 = vpop.eup %3201 }
 0x1f1   :  { %117 = vrot.lane.b32.xlu1 %v3202_v26, %s3390_s18 }
 0x263   :  { %v118_v27 = vpop.permute.xlu1 %117 }
 0x264   :  { %v120_v28 = vmul.f32 %v118_v27, %v103_v20 }
 0x266   :  { %122 = vrot.lane.b32.xlu1 %v120_v28, %s3391_s19  ;;  %v2582_v28 = vld [vmem:[%s3908_s0 + $0x8] sm:$0x3] }
 0x2d8   :  { %v123_v29 = vpop.permute.xlu1 %122 }
 0x2d9   :  { %126 = vst.msk [vmem:[%s3909_s2] sm:$0x3] %vm125_vm4, %v123_v29  ;;  %2802 = vmatmul.mubr.msk.f32.vlgmr.msra.gmra.mrb[0].mxu1 %vm21_vm5, %v123_v29 }
 0x2da   :  { %3066 = vmatpush3.bf16.msra.mxu1 %v3419_v5  ;;  %2823 = vmatprep.mubr.msk.f32.mxu1 %vm3388_vm0, %v3389_v4 }
 0x2db   :  { %3067 = vmatprep.subr.bf16.mxu1 %v3387_v0 }
 0x2de   :  { %3069 = vmatpush3.bf16.msra.mxu1 %v3428_v7 }
 0x2df   :  { %3076 = vmatprep.subr.bf16.mxu1 %v3387_v0 }
 0x3ac   :  { %v197_v31 = vpop.f32.mrb[0].mxu1 }
 0x3ad   :  { %v201_v32 = vadd.f32 %v2570_v30, %v197_v31  ;;  %v2803_v33 = vpop.f32.mrb[1].mxu1 }
 0x3af   :  { %v2572_v34 = vmul.f32 -1.442695, %v201_v32 }
 0x3b1   :  { %3203 = vpow2.f32 %v2572_v34 }
 0x3b2   :  { %3205 = vtanh.f32 %v201_v32 }
 0x3bb   :  { %v3204_v35 = vpop.eup %3203 }
 0x3bc   :  { %v206_v36 = vadd.f32 1.0, %v3204_v35  ;;  %v3206_v37 = vpop.eup %3205 }
 0x3be   :  { %3207 = vrcp.f32 %v206_v36 }
 0x3c8   :  { %v3208_v38 = vpop.eup %3207 }
 0x3c9   :  { %v209_v39 = vsel %vm3447_vm3, %v3206_v37, %v3208_v38 }
 0x3ca   :  { %212 = vrot.lane.b32.xlu0 %v209_v39, %s3390_s18  ;;  %v210_v42 = vmul.f32 %v209_v39, %v114_v25 }
 0x43c   :  { %v213_v40 = vpop.permute.xlu0 %212 }
 0x43d   :  { %v215_v41 = vmul.f32 %v213_v40, %v209_v39 }
 0x43f   :  { %217 = vrot.lane.b32.xlu1 %v215_v41, %s3391_s19 }
 0x4b1   :  { %v218_v43 = vpop.permute.xlu1 %217 }
 0x4b2   :  { %v220_v44 = vadd.f32 %v218_v43, %v210_v42 }
 0x4b4   :  { %3209 = vtanh.f32 %v220_v44 }
 0x4be   :  { %v3210_v45 = vpop.eup %3209 }
 0x4bf   :  { %223 = vrot.lane.b32.xlu0 %v3210_v45, %s3390_s18 }
 0x531   :  { %v224_v46 = vpop.permute.xlu0 %223 }
 0x532   :  { %v226_v47 = vmul.f32 %v224_v46, %v209_v39 }
 0x534   :  { %228 = vrot.lane.b32.xlu1 %v226_v47, %s3391_s19  ;;  %v2586_v47 = vld [vmem:[%s3908_s0 + $0xa] sm:$0x3] }
 0x5a6   :  { %v229_v48 = vpop.permute.xlu1 %228 }
 0x5a7   :  { %2573 = vst.msk [vmem:[%s3909_s2 + $0x2] sm:$0x3] %vm125_vm4, %v229_v48  ;;  %2813 = vmatmul.mubr.msk.f32.vlgmr.msra.gmra.mrb[2].mxu0 %vm21_vm5, %v229_v48 }
 0x5a8   :  { %3072 = vmatpush3.bf16.msra.mxu0 %v3419_v5  ;;  %2834 = vmatprep.mubr.msk.f32.mxu0 %vm3388_vm0, %v3389_v4 }
 0x5a9   :  { %3073 = vmatprep.subr.bf16.mxu0 %v3387_v0 }
 0x5ac   :  { %3075 = vmatpush3.bf16.msra.mxu0 %v3428_v7 }
 0x5ad   :  { %3082 = vmatprep.subr.bf16.mxu0 %v3387_v0 }
 0x67a   :  { %v303_v50 = vpop.f32.mrb[2].mxu0 }
 0x67b   :  { %v307_v51 = vadd.f32 %v2574_v49, %v303_v50  ;;  %v2814_v52 = vpop.f32.mrb[3].mxu0 }
 0x67d   :  { %v2576_v53 = vmul.f32 -1.442695, %v307_v51 }
 0x67f   :  { %3211 = vpow2.f32 %v2576_v53 }
 0x680   :  { %3213 = vtanh.f32 %v307_v51 }
 0x689   :  { %v3212_v54 = vpop.eup %3211 }
 0x68a   :  { %v312_v55 = vadd.f32 1.0, %v3212_v54  ;;  %v3214_v56 = vpop.eup %3213 }
 0x68c   :  { %3215 = vrcp.f32 %v312_v55 }
 0x696   :  { %v3216_v57 = vpop.eup %3215 }
 0x697   :  { %v315_v58 = vsel %vm3447_vm3, %v3214_v56, %v3216_v57 }
 0x698   :  { %318 = vrot.lane.b32.xlu0 %v315_v58, %s3390_s18  ;;  %v316_v61 = vmul.f32 %v315_v58, %v220_v44 }
 0x70a   :  { %v319_v59 = vpop.permute.xlu0 %318 }
 0x70b   :  { %v321_v60 = vmul.f32 %v319_v59, %v315_v58 }
 0x70d   :  { %323 = vrot.lane.b32.xlu1 %v321_v60, %s3391_s19 }
 0x77f   :  { %v324_v62 = vpop.permute.xlu1 %323 }
 0x780   :  { %v326_v63 = vadd.f32 %v324_v62, %v316_v61 }
 0x782   :  { %3217 = vtanh.f32 %v326_v63 }
 0x78c   :  { %v3218_v1 = vpop.eup %3217 }
 0x78d   :  { %329 = vrot.lane.b32.xlu0 %v3218_v1, %s3390_s18 }
 0x7ff   :  { %v330_v2 = vpop.permute.xlu0 %329 }
 0x800   :  { %v332_v3 = vmul.f32 %v330_v2, %v315_v58 }
 0x802   :  { %334 = vrot.lane.b32.xlu1 %v332_v3, %s3391_s19  ;;  %v2590_v3 = vld [vmem:[%s3908_s0 + $0xc] sm:$0x3] }
 0x874   :  { %v335_v6 = vpop.permute.xlu1 %334 }
 0x875   :  { %2577 = vst.msk [vmem:[%s3909_s2 + $0x4] sm:$0x3] %vm125_vm4, %v335_v6  ;;  %2824 = vmatmul.mubr.msk.f32.vlgmr.msra.gmra.mrb[2].mxu1 %vm21_vm5, %v335_v6 }
 0x876   :  { %3078 = vmatpush3.bf16.msra.mxu1 %v3419_v5  ;;  %2845 = vmatprep.mubr.msk.f32.mxu1 %vm3388_vm0, %v3389_v4 }
 0x877   :  { %3079 = vmatprep.subr.bf16.mxu1 %v3387_v0 }
 0x87a   :  { %3081 = vmatpush3.bf16.msra.mxu1 %v3428_v7 }
 0x87b   :  { %3088 = vmatprep.subr.bf16.mxu1 %v3387_v0 }
 0x948   :  { %v409_v9 = vpop.f32.mrb[2].mxu1 }
 0x949   :  { %v413_v10 = vadd.f32 %v2578_v8, %v409_v9  ;;  %v2825_v11 = vpop.f32.mrb[3].mxu1 }
 0x94b   :  { %v2580_v12 = vmul.f32 -1.442695, %v413_v10 }
 0x94d   :  { %3219 = vpow2.f32 %v2580_v12 }
 0x94e   :  { %3221 = vtanh.f32 %v413_v10 }
 0x957   :  { %v3220_v13 = vpop.eup %3219 }
 0x958   :  { %v418_v14 = vadd.f32 1.0, %v3220_v13  ;;  %v3222_v15 = vpop.eup %3221 }
 0x95a   :  { %3223 = vrcp.f32 %v418_v14 }
 0x964   :  { %v3224_v16 = vpop.eup %3223 }
 0x965   :  { %v421_v18 = vsel %vm3447_vm3, %v3222_v15, %v3224_v16 }
 0x966   :  { %424 = vrot.lane.b32.xlu0 %v421_v18, %s3390_s18  ;;  %v422_v21 = vmul.f32 %v421_v18, %v326_v63 }
 0x9d8   :  { %v425_v19 = vpop.permute.xlu0 %424 }
 0x9d9   :  { %v427_v20 = vmul.f32 %v425_v19, %v421_v18 }
 0x9db   :  { %429 = vrot.lane.b32.xlu1 %v427_v20, %s3391_s19 }
 0xa4d   :  { %v430_v22 = vpop.permute.xlu1 %429 }
 0xa4e   :  { %v432_v23 = vadd.f32 %v430_v22, %v422_v21 }
 0xa50   :  { %3225 = vtanh.f32 %v432_v23 }
 0xa5a   :  { %v3226_v24 = vpop.eup %3225 }
 0xa5b   :  { %435 = vrot.lane.b32.xlu0 %v3226_v24, %s3390_s18 }
 0xacd   :  { %v436_v25 = vpop.permute.xlu0 %435 }
 0xace   :  { %v438_v26 = vmul.f32 %v436_v25, %v421_v18 }
 0xad0   :  { %440 = vrot.lane.b32.xlu1 %v438_v26, %s3391_s19  ;;  %v2594_v26 = vld [vmem:[%s3908_s0 + $0xe] sm:$0x3] }
 0xb42   :  { %v441_v27 = vpop.permute.xlu1 %440 }
 0xb43   :  { %2581 = vst.msk [vmem:[%s3909_s2 + $0x6] sm:$0x3] %vm125_vm4, %v441_v27  ;;  %2835 = vmatmul.mubr.msk.f32.vlgmr.msra.gmra.mrb[4].mxu0 %vm21_vm5, %v441_v27 }
 0xb44   :  { %3084 = vmatpush3.bf16.msra.mxu0 %v3419_v5  ;;  %2856 = vmatprep.mubr.msk.f32.mxu0 %vm3388_vm0, %v3389_v4 }
 0xb45   :  { %3085 = vmatprep.subr.bf16.mxu0 %v3387_v0 }
 0xb48   :  { %3087 = vmatpush3.bf16.msra.mxu0 %v3428_v7 }
 0xb49   :  { %3094 = vmatprep.subr.bf16.mxu0 %v3387_v0 }
 0xc16   :  { %v515_v29 = vpop.f32.mrb[4].mxu0 }
 0xc17   :  { %v519_v30 = vadd.f32 %v2582_v28, %v515_v29  ;;  %v2836_v31 = vpop.f32.mrb[5].mxu0 }
 0xc19   :  { %v2584_v32 = vmul.f32 -1.442695, %v519_v30 }
 0xc1b   :  { %3227 = vpow2.f32 %v2584_v32 }
 0xc1c   :  { %3229 = vtanh.f32 %v519_v30 }
 0xc25   :  { %v3228_v33 = vpop.eup %3227 }
 0xc26   :  { %v524_v34 = vadd.f32 1.0, %v3228_v33  ;;  %v3230_v35 = vpop.eup %3229 }
 0xc28   :  { %3231 = vrcp.f32 %v524_v34 }
 0xc32   :  { %v3232_v36 = vpop.eup %3231 }
 0xc33   :  { %v527_v37 = vsel %vm3447_vm3, %v3230_v35, %v3232_v36 }
 0xc34   :  { %530 = vrot.lane.b32.xlu0 %v527_v37, %s3390_s18  ;;  %v528_v40 = vmul.f32 %v527_v37, %v432_v23 }
 0xca6   :  { %v531_v38 = vpop.permute.xlu0 %530 }
 0xca7   :  { %v533_v39 = vmul.f32 %v531_v38, %v527_v37 }
 0xca9   :  { %535 = vrot.lane.b32.xlu1 %v533_v39, %s3391_s19 }
 0xd1b   :  { %v536_v41 = vpop.permute.xlu1 %535 }
 0xd1c   :  { %v538_v42 = vadd.f32 %v536_v41, %v528_v40 }
 0xd1e   :  { %3233 = vtanh.f32 %v538_v42 }
 0xd28   :  { %v3234_v43 = vpop.eup %3233 }
 0xd29   :  { %541 = vrot.lane.b32.xlu0 %v3234_v43, %s3390_s18 }
 0xd9b   :  { %v542_v44 = vpop.permute.xlu0 %541 }
 0xd9c   :  { %v544_v45 = vmul.f32 %v542_v44, %v527_v37 }
 0xd9e   :  { %546 = vrot.lane.b32.xlu1 %v544_v45, %s3391_s19  ;;  %v2598_v45 = vld [vmem:[%s3908_s0 + $0x10] sm:$0x3] }
 0xe10   :  { %v547_v46 = vpop.permute.xlu1 %546 }
 0xe11   :  { %2585 = vst.msk [vmem:[%s3909_s2 + $0x8] sm:$0x3] %vm125_vm4, %v547_v46  ;;  %2846 = vmatmul.mubr.msk.f32.vlgmr.msra.gmra.mrb[4].mxu1 %vm21_vm5, %v547_v46 }
 0xe12   :  { %3090 = vmatpush3.bf16.msra.mxu1 %v3419_v5  ;;  %2867 = vmatprep.mubr.msk.f32.mxu1 %vm3388_vm0, %v3389_v4 }
 0xe13   :  { %3091 = vmatprep.subr.bf16.mxu1 %v3387_v0 }
 0xe16   :  { %3093 = vmatpush3.bf16.msra.mxu1 %v3428_v7 }
 0xe17   :  { %3100 = vmatprep.subr.bf16.mxu1 %v3387_v0 }
 0xee4   :  { %v621_v48 = vpop.f32.mrb[4].mxu1 }
 0xee5   :  { %v625_v49 = vadd.f32 %v2586_v47, %v621_v48  ;;  %v2847_v50 = vpop.f32.mrb[5].mxu1 }
 0xee7   :  { %v2588_v51 = vmul.f32 -1.442695, %v625_v49 }
 0xee9   :  { %3235 = vpow2.f32 %v2588_v51 }
 0xeea   :  { %3237 = vtanh.f32 %v625_v49 }
 0xef3   :  { %v3236_v52 = vpop.eup %3235 }
 0xef4   :  { %v630_v53 = vadd.f32 1.0, %v3236_v52  ;;  %v3238_v54 = vpop.eup %3237 }
 0xef6   :  { %3239 = vrcp.f32 %v630_v53 }
 0xf00   :  { %v3240_v55 = vpop.eup %3239 }
 0xf01   :  { %v633_v56 = vsel %vm3447_vm3, %v3238_v54, %v3240_v55 }
 0xf02   :  { %636 = vrot.lane.b32.xlu0 %v633_v56, %s3390_s18  ;;  %v634_v59 = vmul.f32 %v633_v56, %v538_v42 }
 0xf74   :  { %v637_v57 = vpop.permute.xlu0 %636 }
 0xf75   :  { %v639_v58 = vmul.f32 %v637_v57, %v633_v56 }
 0xf77   :  { %641 = vrot.lane.b32.xlu1 %v639_v58, %s3391_s19 }
 0xfe9   :  { %v642_v60 = vpop.permute.xlu1 %641 }
 0xfea   :  { %v644_v61 = vadd.f32 %v642_v60, %v634_v59 }
 0xfec   :  { %3241 = vtanh.f32 %v644_v61 }
 0xff6   :  { %v3242_v62 = vpop.eup %3241 }
 0xff7   :  { %647 = vrot.lane.b32.xlu0 %v3242_v62, %s3390_s18 }
0x1069   :  { %v648_v63 = vpop.permute.xlu0 %647 }
0x106a   :  { %v650_v1 = vmul.f32 %v648_v63, %v633_v56 }
0x106c   :  { %652 = vrot.lane.b32.xlu1 %v650_v1, %s3391_s19  ;;  %v2602_v1 = vld [vmem:[%s3908_s0 + $0x12] sm:$0x3] }
0x10de   :  { %v653_v2 = vpop.permute.xlu1 %652 }
0x10df   :  { %2589 = vst.msk [vmem:[%s3909_s2 + $0xa] sm:$0x3] %vm125_vm4, %v653_v2  ;;  %2857 = vmatmul.mubr.msk.f32.vlgmr.msra.gmra.mrb[6].mxu0 %vm21_vm5, %v653_v2 }
0x10e0   :  { %3096 = vmatpush3.bf16.msra.mxu0 %v3419_v5  ;;  %2878 = vmatprep.mubr.msk.f32.mxu0 %vm3388_vm0, %v3389_v4 }
0x10e1   :  { %3097 = vmatprep.subr.bf16.mxu0 %v3387_v0 }
0x10e4   :  { %3099 = vmatpush3.bf16.msra.mxu0 %v3428_v7 }
0x10e5   :  { %3106 = vmatprep.subr.bf16.mxu0 %v3387_v0 }
0x11b2   :  { %v727_v6 = vpop.f32.mrb[6].mxu0 }
0x11b3   :  { %v731_v8 = vadd.f32 %v2590_v3, %v727_v6  ;;  %v2858_v9 = vpop.f32.mrb[7].mxu0 }
0x11b5   :  { %v2592_v10 = vmul.f32 -1.442695, %v731_v8 }
0x11b7   :  { %3243 = vpow2.f32 %v2592_v10 }
0x11b8   :  { %3245 = vtanh.f32 %v731_v8 }
0x11c1   :  { %v3244_v11 = vpop.eup %3243 }
0x11c2   :  { %v736_v12 = vadd.f32 1.0, %v3244_v11  ;;  %v3246_v13 = vpop.eup %3245 }
0x11c4   :  { %3247 = vrcp.f32 %v736_v12 }
0x11ce   :  { %v3248_v14 = vpop.eup %3247 }
0x11cf   :  { %v739_v15 = vsel %vm3447_vm3, %v3246_v13, %v3248_v14 }
0x11d0   :  { %742 = vrot.lane.b32.xlu0 %v739_v15, %s3390_s18  ;;  %v740_v19 = vmul.f32 %v739_v15, %v644_v61 }
0x1242   :  { %v743_v16 = vpop.permute.xlu0 %742 }
0x1243   :  { %v745_v18 = vmul.f32 %v743_v16, %v739_v15 }
0x1245   :  { %747 = vrot.lane.b32.xlu1 %v745_v18, %s3391_s19 }
0x12b7   :  { %v748_v20 = vpop.permute.xlu1 %747 }
0x12b8   :  { %v750_v21 = vadd.f32 %v748_v20, %v740_v19 }
0x12ba   :  { %3249 = vtanh.f32 %v750_v21 }
0x12c4   :  { %v3250_v22 = vpop.eup %3249 }
0x12c5   :  { %753 = vrot.lane.b32.xlu0 %v3250_v22, %s3390_s18 }
0x1337   :  { %v754_v23 = vpop.permute.xlu0 %753 }
0x1338   :  { %v756_v24 = vmul.f32 %v754_v23, %v739_v15 }
0x133a   :  { %758 = vrot.lane.b32.xlu1 %v756_v24, %s3391_s19  ;;  %v2606_v24 = vld [vmem:[%s3908_s0 + $0x14] sm:$0x3] }
0x13ac   :  { %v759_v25 = vpop.permute.xlu1 %758 }
0x13ad   :  { %2593 = vst.msk [vmem:[%s3909_s2 + $0xc] sm:$0x3] %vm125_vm4, %v759_v25  ;;  %2868 = vmatmul.mubr.msk.f32.vlgmr.msra.gmra.mrb[6].mxu1 %vm21_vm5, %v759_v25 }
0x13ae   :  { %3102 = vmatpush3.bf16.msra.mxu1 %v3419_v5  ;;  %2889 = vmatprep.mubr.msk.f32.mxu1 %vm3388_vm0, %v3389_v4 }
0x13af   :  { %3103 = vmatprep.subr.bf16.mxu1 %v3387_v0 }
0x13b2   :  { %3105 = vmatpush3.bf16.msra.mxu1 %v3428_v7 }
0x13b3   :  { %3112 = vmatprep.subr.bf16.mxu1 %v3387_v0 }
0x1480   :  { %v833_v27 = vpop.f32.mrb[6].mxu1 }
0x1481   :  { %v837_v28 = vadd.f32 %v2594_v26, %v833_v27  ;;  %v2869_v29 = vpop.f32.mrb[7].mxu1 }
0x1483   :  { %v2596_v30 = vmul.f32 -1.442695, %v837_v28 }
0x1485   :  { %3251 = vpow2.f32 %v2596_v30 }
0x1486   :  { %3253 = vtanh.f32 %v837_v28 }
0x148f   :  { %v3252_v31 = vpop.eup %3251 }
0x1490   :  { %v842_v32 = vadd.f32 1.0, %v3252_v31  ;;  %v3254_v33 = vpop.eup %3253 }
0x1492   :  { %3255 = vrcp.f32 %v842_v32 }
0x149c   :  { %v3256_v34 = vpop.eup %3255 }
0x149d   :  { %v845_v35 = vsel %vm3447_vm3, %v3254_v33, %v3256_v34 }
0x149e   :  { %848 = vrot.lane.b32.xlu0 %v845_v35, %s3390_s18  ;;  %v846_v38 = vmul.f32 %v845_v35, %v750_v21 }
0x1510   :  { %v849_v36 = vpop.permute.xlu0 %848 }
0x1511   :  { %v851_v37 = vmul.f32 %v849_v36, %v845_v35 }
0x1513   :  { %853 = vrot.lane.b32.xlu1 %v851_v37, %s3391_s19 }
0x1585   :  { %v854_v39 = vpop.permute.xlu1 %853 }
0x1586   :  { %v856_v40 = vadd.f32 %v854_v39, %v846_v38 }
0x1588   :  { %3257 = vtanh.f32 %v856_v40 }
0x1592   :  { %v3258_v41 = vpop.eup %3257 }
0x1593   :  { %859 = vrot.lane.b32.xlu0 %v3258_v41, %s3390_s18 }
0x1605   :  { %v860_v42 = vpop.permute.xlu0 %859 }
0x1606   :  { %v862_v43 = vmul.f32 %v860_v42, %v845_v35 }
0x1608   :  { %864 = vrot.lane.b32.xlu1 %v862_v43, %s3391_s19  ;;  %v2610_v43 = vld [vmem:[%s3908_s0 + $0x16] sm:$0x3] }
0x167a   :  { %v865_v44 = vpop.permute.xlu1 %864 }
0x167b   :  { %2597 = vst.msk [vmem:[%s3909_s2 + $0xe] sm:$0x3] %vm125_vm4, %v865_v44  ;;  %2879 = vmatmul.mubr.msk.f32.vlgmr.msra.gmra.mrb[8].mxu0 %vm21_vm5, %v865_v44 }
0x167c   :  { %3108 = vmatpush3.bf16.msra.mxu0 %v3419_v5  ;;  %2900 = vmatprep.mubr.msk.f32.mxu0 %vm3388_vm0, %v3389_v4 }
0x167d   :  { %3109 = vmatprep.subr.bf16.mxu0 %v3387_v0 }
0x1680   :  { %3111 = vmatpush3.bf16.msra.mxu0 %v3428_v7 }
0x1681   :  { %3118 = vmatprep.subr.bf16.mxu0 %v3387_v0 }
0x174e   :  { %v939_v46 = vpop.f32.mrb[8].mxu0 }
0x174f   :  { %v943_v47 = vadd.f32 %v2598_v45, %v939_v46  ;;  %v2880_v48 = vpop.f32.mrb[9].mxu0 }
0x1751   :  { %v2600_v49 = vmul.f32 -1.442695, %v943_v47 }
0x1753   :  { %3259 = vpow2.f32 %v2600_v49 }
0x1754   :  { %3261 = vtanh.f32 %v943_v47 }
0x175d   :  { %v3260_v50 = vpop.eup %3259 }
0x175e   :  { %v948_v51 = vadd.f32 1.0, %v3260_v50  ;;  %v3262_v52 = vpop.eup %3261 }
0x1760   :  { %3263 = vrcp.f32 %v948_v51 }
0x176a   :  { %v3264_v53 = vpop.eup %3263 }
0x176b   :  { %v951_v54 = vsel %vm3447_vm3, %v3262_v52, %v3264_v53 }
0x176c   :  { %954 = vrot.lane.b32.xlu0 %v951_v54, %s3390_s18  ;;  %v952_v57 = vmul.f32 %v951_v54, %v856_v40 }
0x17de   :  { %v955_v55 = vpop.permute.xlu0 %954 }
0x17df   :  { %v957_v56 = vmul.f32 %v955_v55, %v951_v54 }
0x17e1   :  { %959 = vrot.lane.b32.xlu1 %v957_v56, %s3391_s19 }
0x1853   :  { %v960_v58 = vpop.permute.xlu1 %959 }
0x1854   :  { %v962_v59 = vadd.f32 %v960_v58, %v952_v57 }
0x1856   :  { %3265 = vtanh.f32 %v962_v59 }
0x1860   :  { %v3266_v60 = vpop.eup %3265 }
0x1861   :  { %965 = vrot.lane.b32.xlu0 %v3266_v60, %s3390_s18 }
0x18d3   :  { %v966_v61 = vpop.permute.xlu0 %965 }
0x18d4   :  { %v968_v62 = vmul.f32 %v966_v61, %v951_v54 }
0x18d6   :  { %970 = vrot.lane.b32.xlu1 %v968_v62, %s3391_s19  ;;  %v2614_v62 = vld [vmem:[%s3908_s0 + $0x18] sm:$0x3] }
0x1948   :  { %v971_v63 = vpop.permute.xlu1 %970 }
0x1949   :  { %2601 = vst.msk [vmem:[%s3909_s2 + $0x10] sm:$0x3] %vm125_vm4, %v971_v63  ;;  %2890 = vmatmul.mubr.msk.f32.vlgmr.msra.gmra.mrb[8].mxu1 %vm21_vm5, %v971_v63 }
0x194a   :  { %3114 = vmatpush3.bf16.msra.mxu1 %v3419_v5  ;;  %2911 = vmatprep.mubr.msk.f32.mxu1 %vm3388_vm0, %v3389_v4 }
0x194b   :  { %3115 = vmatprep.subr.bf16.mxu1 %v3387_v0 }
0x194e   :  { %3117 = vmatpush3.bf16.msra.mxu1 %v3428_v7 }
0x194f   :  { %3124 = vmatprep.subr.bf16.mxu1 %v3387_v0 }
0x1a1c   :  { %v1045_v2 = vpop.f32.mrb[8].mxu1 }
0x1a1d   :  { %v1049_v3 = vadd.f32 %v2602_v1, %v1045_v2  ;;  %v2891_v6 = vpop.f32.mrb[9].mxu1 }
0x1a1f   :  { %v2604_v8 = vmul.f32 -1.442695, %v1049_v3 }
0x1a21   :  { %3267 = vpow2.f32 %v2604_v8 }
0x1a22   :  { %3269 = vtanh.f32 %v1049_v3 }
0x1a2b   :  { %v3268_v9 = vpop.eup %3267 }
0x1a2c   :  { %v1054_v10 = vadd.f32 1.0, %v3268_v9  ;;  %v3270_v11 = vpop.eup %3269 }
0x1a2e   :  { %3271 = vrcp.f32 %v1054_v10 }
0x1a38   :  { %v3272_v12 = vpop.eup %3271 }
0x1a39   :  { %v1057_v13 = vsel %vm3447_vm3, %v3270_v11, %v3272_v12 }
0x1a3a   :  { %1060 = vrot.lane.b32.xlu0 %v1057_v13, %s3390_s18  ;;  %v1058_v16 = vmul.f32 %v1057_v13, %v962_v59 }
0x1aac   :  { %v1061_v14 = vpop.permute.xlu0 %1060 }
0x1aad   :  { %v1063_v15 = vmul.f32 %v1061_v14, %v1057_v13 }
0x1aaf   :  { %1065 = vrot.lane.b32.xlu1 %v1063_v15, %s3391_s19 }
0x1b21   :  { %v1066_v18 = vpop.permute.xlu1 %1065 }
0x1b22   :  { %v1068_v19 = vadd.f32 %v1066_v18, %v1058_v16 }
0x1b24   :  { %3273 = vtanh.f32 %v1068_v19 }
0x1b2e   :  { %v3274_v20 = vpop.eup %3273 }
0x1b2f   :  { %1071 = vrot.lane.b32.xlu0 %v3274_v20, %s3390_s18 }
0x1ba1   :  { %v1072_v21 = vpop.permute.xlu0 %1071 }
0x1ba2   :  { %v1074_v22 = vmul.f32 %v1072_v21, %v1057_v13 }
0x1ba4   :  { %1076 = vrot.lane.b32.xlu1 %v1074_v22, %s3391_s19  ;;  %v2618_v22 = vld [vmem:[%s3908_s0 + $0x1a] sm:$0x3] }
0x1c16   :  { %v1077_v23 = vpop.permute.xlu1 %1076 }
0x1c17   :  { %2605 = vst.msk [vmem:[%s3909_s2 + $0x12] sm:$0x3] %vm125_vm4, %v1077_v23  ;;  %2901 = vmatmul.mubr.msk.f32.vlgmr.msra.gmra.mrb[10].mxu0 %vm21_vm5, %v1077_v23 }
0x1c18   :  { %3120 = vmatpush3.bf16.msra.mxu0 %v3419_v5  ;;  %2922 = vmatprep.mubr.msk.f32.mxu0 %vm3388_vm0, %v3389_v4 }
0x1c19   :  { %3121 = vmatprep.subr.bf16.mxu0 %v3387_v0 }
0x1c1c   :  { %3123 = vmatpush3.bf16.msra.mxu0 %v3428_v7 }
0x1c1d   :  { %3130 = vmatprep.subr.bf16.mxu0 %v3387_v0 }
0x1cea   :  { %v1151_v25 = vpop.f32.mrb[10].mxu0 }
0x1ceb   :  { %v1155_v26 = vadd.f32 %v2606_v24, %v1151_v25  ;;  %v2902_v27 = vpop.f32.mrb[11].mxu0 }
0x1ced   :  { %v2608_v28 = vmul.f32 -1.442695, %v1155_v26 }
0x1cef   :  { %3275 = vpow2.f32 %v2608_v28 }
0x1cf0   :  { %3277 = vtanh.f32 %v1155_v26 }
0x1cf9   :  { %v3276_v29 = vpop.eup %3275 }
0x1cfa   :  { %v1160_v30 = vadd.f32 1.0, %v3276_v29  ;;  %v3278_v31 = vpop.eup %3277 }
0x1cfc   :  { %3279 = vrcp.f32 %v1160_v30 }
0x1d06   :  { %v3280_v32 = vpop.eup %3279 }
0x1d07   :  { %v1163_v33 = vsel %vm3447_vm3, %v3278_v31, %v3280_v32 }
0x1d08   :  { %1166 = vrot.lane.b32.xlu0 %v1163_v33, %s3390_s18  ;;  %v1164_v36 = vmul.f32 %v1163_v33, %v1068_v19 }
0x1d7a   :  { %v1167_v34 = vpop.permute.xlu0 %1166 }
0x1d7b   :  { %v1169_v35 = vmul.f32 %v1167_v34, %v1163_v33 }
0x1d7d   :  { %1171 = vrot.lane.b32.xlu1 %v1169_v35, %s3391_s19 }
0x1def   :  { %v1172_v37 = vpop.permute.xlu1 %1171 }
0x1df0   :  { %v1174_v38 = vadd.f32 %v1172_v37, %v1164_v36 }
0x1df2   :  { %3281 = vtanh.f32 %v1174_v38 }
0x1dfc   :  { %v3282_v39 = vpop.eup %3281 }
0x1dfd   :  { %1177 = vrot.lane.b32.xlu0 %v3282_v39, %s3390_s18 }
0x1e6f   :  { %v1178_v40 = vpop.permute.xlu0 %1177 }
0x1e70   :  { %v1180_v41 = vmul.f32 %v1178_v40, %v1163_v33 }
0x1e72   :  { %1182 = vrot.lane.b32.xlu1 %v1180_v41, %s3391_s19  ;;  %v2622_v41 = vld [vmem:[%s3908_s0 + $0x1c] sm:$0x3] }
0x1ee4   :  { %v1183_v42 = vpop.permute.xlu1 %1182 }
0x1ee5   :  { %2609 = vst.msk [vmem:[%s3909_s2 + $0x14] sm:$0x3] %vm125_vm4, %v1183_v42  ;;  %2912 = vmatmul.mubr.msk.f32.vlgmr.msra.gmra.mrb[10].mxu1 %vm21_vm5, %v1183_v42 }
0x1ee6   :  { %3126 = vmatpush3.bf16.msra.mxu1 %v3419_v5  ;;  %2933 = vmatprep.mubr.msk.f32.mxu1 %vm3388_vm0, %v3389_v4 }
0x1ee7   :  { %3127 = vmatprep.subr.bf16.mxu1 %v3387_v0 }
0x1eea   :  { %3129 = vmatpush3.bf16.msra.mxu1 %v3428_v7 }
0x1eeb   :  { %3136 = vmatprep.subr.bf16.mxu1 %v3387_v0 }
0x1fb8   :  { %v1257_v44 = vpop.f32.mrb[10].mxu1 }
0x1fb9   :  { %v1261_v45 = vadd.f32 %v2610_v43, %v1257_v44  ;;  %v2913_v46 = vpop.f32.mrb[11].mxu1 }
0x1fbb   :  { %v2612_v47 = vmul.f32 -1.442695, %v1261_v45 }
0x1fbd   :  { %3283 = vpow2.f32 %v2612_v47 }
0x1fbe   :  { %3285 = vtanh.f32 %v1261_v45 }
0x1fc7   :  { %v3284_v48 = vpop.eup %3283 }
0x1fc8   :  { %v1266_v49 = vadd.f32 1.0, %v3284_v48  ;;  %v3286_v50 = vpop.eup %3285 }
0x1fca   :  { %3287 = vrcp.f32 %v1266_v49 }
0x1fd4   :  { %v3288_v51 = vpop.eup %3287 }
0x1fd5   :  { %v1269_v52 = vsel %vm3447_vm3, %v3286_v50, %v3288_v51 }
0x1fd6   :  { %1272 = vrot.lane.b32.xlu0 %v1269_v52, %s3390_s18  ;;  %v1270_v55 = vmul.f32 %v1269_v52, %v1174_v38 }
0x2048   :  { %v1273_v53 = vpop.permute.xlu0 %1272 }
0x2049   :  { %v1275_v54 = vmul.f32 %v1273_v53, %v1269_v52 }
0x204b   :  { %1277 = vrot.lane.b32.xlu1 %v1275_v54, %s3391_s19 }
0x20bd   :  { %v1278_v56 = vpop.permute.xlu1 %1277 }
0x20be   :  { %v1280_v57 = vadd.f32 %v1278_v56, %v1270_v55 }
0x20c0   :  { %3289 = vtanh.f32 %v1280_v57 }
0x20ca   :  { %v3290_v58 = vpop.eup %3289 }
0x20cb   :  { %1283 = vrot.lane.b32.xlu0 %v3290_v58, %s3390_s18 }
0x213d   :  { %v1284_v59 = vpop.permute.xlu0 %1283 }
0x213e   :  { %v1286_v60 = vmul.f32 %v1284_v59, %v1269_v52 }
0x2140   :  { %1288 = vrot.lane.b32.xlu1 %v1286_v60, %s3391_s19  ;;  %v2626_v60 = vld [vmem:[%s3908_s0 + $0x1e] sm:$0x3] }
0x21b2   :  { %v1289_v61 = vpop.permute.xlu1 %1288 }
0x21b3   :  { %2613 = vst.msk [vmem:[%s3909_s2 + $0x16] sm:$0x3] %vm125_vm4, %v1289_v61  ;;  %2923 = vmatmul.mubr.msk.f32.vlgmr.msra.gmra.mrb[12].mxu0 %vm21_vm5, %v1289_v61 }
0x21b4   :  { %3132 = vmatpush3.bf16.msra.mxu0 %v3419_v5  ;;  %2944 = vmatprep.mubr.msk.f32.mxu0 %vm3388_vm0, %v3389_v4 }
0x21b5   :  { %3133 = vmatprep.subr.bf16.mxu0 %v3387_v0 }
0x21b8   :  { %3135 = vmatpush3.bf16.msra.mxu0 %v3428_v7 }
0x21b9   :  { %3142 = vmatprep.subr.bf16.mxu0 %v3387_v0 }
0x2286   :  { %v1363_v63 = vpop.f32.mrb[12].mxu0 }
0x2287   :  { %v1367_v1 = vadd.f32 %v2614_v62, %v1363_v63  ;;  %v2924_v2 = vpop.f32.mrb[13].mxu0 }
0x2289   :  { %v2616_v3 = vmul.f32 -1.442695, %v1367_v1 }
0x228b   :  { %3291 = vpow2.f32 %v2616_v3 }
0x228c   :  { %3293 = vtanh.f32 %v1367_v1 }
0x2295   :  { %v3292_v6 = vpop.eup %3291 }
0x2296   :  { %v1372_v8 = vadd.f32 1.0, %v3292_v6  ;;  %v3294_v9 = vpop.eup %3293 }
0x2298   :  { %3295 = vrcp.f32 %v1372_v8 }
0x22a2   :  { %v3296_v10 = vpop.eup %3295 }
0x22a3   :  { %v1375_v11 = vsel %vm3447_vm3, %v3294_v9, %v3296_v10 }
0x22a4   :  { %1378 = vrot.lane.b32.xlu0 %v1375_v11, %s3390_s18  ;;  %v1376_v14 = vmul.f32 %v1375_v11, %v1280_v57 }
0x2316   :  { %v1379_v12 = vpop.permute.xlu0 %1378 }
0x2317   :  { %v1381_v13 = vmul.f32 %v1379_v12, %v1375_v11 }
0x2319   :  { %1383 = vrot.lane.b32.xlu1 %v1381_v13, %s3391_s19 }
0x238b   :  { %v1384_v15 = vpop.permute.xlu1 %1383 }
0x238c   :  { %v1386_v16 = vadd.f32 %v1384_v15, %v1376_v14 }
0x238e   :  { %3297 = vtanh.f32 %v1386_v16 }
0x2398   :  { %v3298_v18 = vpop.eup %3297 }
0x2399   :  { %1389 = vrot.lane.b32.xlu0 %v3298_v18, %s3390_s18 }
0x240b   :  { %v1390_v19 = vpop.permute.xlu0 %1389 }
0x240c   :  { %v1392_v20 = vmul.f32 %v1390_v19, %v1375_v11 }
0x240e   :  { %1394 = vrot.lane.b32.xlu1 %v1392_v20, %s3391_s19  ;;  %v2630_v20 = vld [vmem:[%s3908_s0 + $0x20] sm:$0x3] }
0x2480   :  { %v1395_v21 = vpop.permute.xlu1 %1394 }
0x2481   :  { %2617 = vst.msk [vmem:[%s3909_s2 + $0x18] sm:$0x3] %vm125_vm4, %v1395_v21  ;;  %2934 = vmatmul.mubr.msk.f32.vlgmr.msra.gmra.mrb[12].mxu1 %vm21_vm5, %v1395_v21 }
0x2482   :  { %3138 = vmatpush3.bf16.msra.mxu1 %v3419_v5  ;;  %2955 = vmatprep.mubr.msk.f32.mxu1 %vm3388_vm0, %v3389_v4 }
0x2483   :  { %3139 = vmatprep.subr.bf16.mxu1 %v3387_v0 }
0x2486   :  { %3141 = vmatpush3.bf16.msra.mxu1 %v3428_v7 }
0x2487   :  { %3148 = vmatprep.subr.bf16.mxu1 %v3387_v0 }
0x2554   :  { %v1469_v23 = vpop.f32.mrb[12].mxu1 }
0x2555   :  { %v1473_v24 = vadd.f32 %v2618_v22, %v1469_v23  ;;  %v2935_v25 = vpop.f32.mrb[13].mxu1 }
0x2557   :  { %v2620_v26 = vmul.f32 -1.442695, %v1473_v24 }
0x2559   :  { %3299 = vpow2.f32 %v2620_v26 }
0x255a   :  { %3301 = vtanh.f32 %v1473_v24 }
0x2563   :  { %v3300_v27 = vpop.eup %3299 }
0x2564   :  { %v1478_v28 = vadd.f32 1.0, %v3300_v27  ;;  %v3302_v29 = vpop.eup %3301 }
0x2566   :  { %3303 = vrcp.f32 %v1478_v28 }
0x2570   :  { %v3304_v30 = vpop.eup %3303 }
0x2571   :  { %v1481_v31 = vsel %vm3447_vm3, %v3302_v29, %v3304_v30 }
0x2572   :  { %1484 = vrot.lane.b32.xlu0 %v1481_v31, %s3390_s18  ;;  %v1482_v34 = vmul.f32 %v1481_v31, %v1386_v16 }
0x25e4   :  { %v1485_v32 = vpop.permute.xlu0 %1484 }
0x25e5   :  { %v1487_v33 = vmul.f32 %v1485_v32, %v1481_v31 }
0x25e7   :  { %1489 = vrot.lane.b32.xlu1 %v1487_v33, %s3391_s19 }
0x2659   :  { %v1490_v35 = vpop.permute.xlu1 %1489 }
0x265a   :  { %v1492_v36 = vadd.f32 %v1490_v35, %v1482_v34 }
0x265c   :  { %3305 = vtanh.f32 %v1492_v36 }
0x2666   :  { %v3306_v37 = vpop.eup %3305 }
0x2667   :  { %1495 = vrot.lane.b32.xlu0 %v3306_v37, %s3390_s18 }
0x26d9   :  { %v1496_v38 = vpop.permute.xlu0 %1495 }
0x26da   :  { %v1498_v39 = vmul.f32 %v1496_v38, %v1481_v31 }
0x26dc   :  { %1500 = vrot.lane.b32.xlu1 %v1498_v39, %s3391_s19  ;;  %v2634_v39 = vld [vmem:[%s3908_s0 + $0x22] sm:$0x3] }
0x274e   :  { %v1501_v40 = vpop.permute.xlu1 %1500 }
0x274f   :  { %2621 = vst.msk [vmem:[%s3909_s2 + $0x1a] sm:$0x3] %vm125_vm4, %v1501_v40  ;;  %2945 = vmatmul.mubr.msk.f32.vlgmr.msra.gmra.mrb[14].mxu0 %vm21_vm5, %v1501_v40 }
0x2750   :  { %3144 = vmatpush3.bf16.msra.mxu0 %v3419_v5  ;;  %2966 = vmatprep.mubr.msk.f32.mxu0 %vm3388_vm0, %v3389_v4 }
0x2751   :  { %3145 = vmatprep.subr.bf16.mxu0 %v3387_v0 }
0x2754   :  { %3147 = vmatpush3.bf16.msra.mxu0 %v3428_v7 }
0x2755   :  { %3154 = vmatprep.subr.bf16.mxu0 %v3387_v0 }
0x2822   :  { %v1575_v42 = vpop.f32.mrb[14].mxu0 }
0x2823   :  { %v1579_v43 = vadd.f32 %v2622_v41, %v1575_v42  ;;  %v2946_v44 = vpop.f32.mrb[15].mxu0 }
0x2825   :  { %v2624_v45 = vmul.f32 -1.442695, %v1579_v43 }
0x2827   :  { %3307 = vpow2.f32 %v2624_v45 }
0x2828   :  { %3309 = vtanh.f32 %v1579_v43 }
0x2831   :  { %v3308_v46 = vpop.eup %3307 }
0x2832   :  { %v1584_v47 = vadd.f32 1.0, %v3308_v46  ;;  %v3310_v48 = vpop.eup %3309 }
0x2834   :  { %3311 = vrcp.f32 %v1584_v47 }
0x283e   :  { %v3312_v49 = vpop.eup %3311 }
0x283f   :  { %v1587_v50 = vsel %vm3447_vm3, %v3310_v48, %v3312_v49 }
0x2840   :  { %1590 = vrot.lane.b32.xlu0 %v1587_v50, %s3390_s18  ;;  %v1588_v53 = vmul.f32 %v1587_v50, %v1492_v36 }
0x28b2   :  { %v1591_v51 = vpop.permute.xlu0 %1590 }
0x28b3   :  { %v1593_v52 = vmul.f32 %v1591_v51, %v1587_v50 }
0x28b5   :  { %1595 = vrot.lane.b32.xlu1 %v1593_v52, %s3391_s19 }
0x2927   :  { %v1596_v54 = vpop.permute.xlu1 %1595 }
0x2928   :  { %v1598_v55 = vadd.f32 %v1596_v54, %v1588_v53 }
0x292a   :  { %3313 = vtanh.f32 %v1598_v55 }
0x2934   :  { %v3314_v56 = vpop.eup %3313 }
0x2935   :  { %1601 = vrot.lane.b32.xlu0 %v3314_v56, %s3390_s18 }
0x29a7   :  { %v1602_v57 = vpop.permute.xlu0 %1601 }
0x29a8   :  { %v1604_v58 = vmul.f32 %v1602_v57, %v1587_v50 }
0x29aa   :  { %1606 = vrot.lane.b32.xlu1 %v1604_v58, %s3391_s19  ;;  %v2638_v58 = vld [vmem:[%s3908_s0 + $0x24] sm:$0x3] }
0x2a1c   :  { %v1607_v59 = vpop.permute.xlu1 %1606 }
0x2a1d   :  { %2625 = vst.msk [vmem:[%s3909_s2 + $0x1c] sm:$0x3] %vm125_vm4, %v1607_v59  ;;  %2956 = vmatmul.mubr.msk.f32.vlgmr.msra.gmra.mrb[14].mxu1 %vm21_vm5, %v1607_v59 }
0x2a1e   :  { %3150 = vmatpush3.bf16.msra.mxu1 %v3419_v5  ;;  %2977 = vmatprep.mubr.msk.f32.mxu1 %vm3388_vm0, %v3389_v4 }
0x2a1f   :  { %3151 = vmatprep.subr.bf16.mxu1 %v3387_v0 }
0x2a22   :  { %3153 = vmatpush3.bf16.msra.mxu1 %v3428_v7 }
0x2a23   :  { %3160 = vmatprep.subr.bf16.mxu1 %v3387_v0 }
0x2af0   :  { %v1681_v61 = vpop.f32.mrb[14].mxu1 }
0x2af1   :  { %v1685_v62 = vadd.f32 %v2626_v60, %v1681_v61  ;;  %v2957_v63 = vpop.f32.mrb[15].mxu1 }
0x2af3   :  { %v2628_v1 = vmul.f32 -1.442695, %v1685_v62 }
0x2af5   :  { %3315 = vpow2.f32 %v2628_v1 }
0x2af6   :  { %3317 = vtanh.f32 %v1685_v62 }
0x2aff   :  { %v3316_v2 = vpop.eup %3315 }
0x2b00   :  { %v1690_v3 = vadd.f32 1.0, %v3316_v2  ;;  %v3318_v6 = vpop.eup %3317 }
0x2b02   :  { %3319 = vrcp.f32 %v1690_v3 }
0x2b0c   :  { %v3320_v8 = vpop.eup %3319 }
0x2b0d   :  { %v1693_v9 = vsel %vm3447_vm3, %v3318_v6, %v3320_v8 }
0x2b0e   :  { %1696 = vrot.lane.b32.xlu0 %v1693_v9, %s3390_s18  ;;  %v1694_v12 = vmul.f32 %v1693_v9, %v1598_v55 }
0x2b80   :  { %v1697_v10 = vpop.permute.xlu0 %1696 }
0x2b81   :  { %v1699_v11 = vmul.f32 %v1697_v10, %v1693_v9 }
0x2b83   :  { %1701 = vrot.lane.b32.xlu1 %v1699_v11, %s3391_s19 }
0x2bf5   :  { %v1702_v13 = vpop.permute.xlu1 %1701 }
0x2bf6   :  { %v1704_v14 = vadd.f32 %v1702_v13, %v1694_v12 }
0x2bf8   :  { %3321 = vtanh.f32 %v1704_v14 }
0x2c02   :  { %v3322_v15 = vpop.eup %3321 }
0x2c03   :  { %1707 = vrot.lane.b32.xlu0 %v3322_v15, %s3390_s18 }
0x2c75   :  { %v1708_v16 = vpop.permute.xlu0 %1707 }
0x2c76   :  { %v1710_v18 = vmul.f32 %v1708_v16, %v1693_v9 }
0x2c78   :  { %1712 = vrot.lane.b32.xlu1 %v1710_v18, %s3391_s19  ;;  %v2642_v18 = vld [vmem:[%s3908_s0 + $0x26] sm:$0x3] }
0x2cea   :  { %v1713_v19 = vpop.permute.xlu1 %1712 }
0x2ceb   :  { %2629 = vst.msk [vmem:[%s3909_s2 + $0x1e] sm:$0x3] %vm125_vm4, %v1713_v19  ;;  %2967 = vmatmul.mubr.msk.f32.vlgmr.msra.gmra.mrb[16].mxu0 %vm21_vm5, %v1713_v19 }
0x2cec   :  { %3156 = vmatpush3.bf16.msra.mxu0 %v3419_v5  ;;  %2988 = vmatprep.mubr.msk.f32.mxu0 %vm3388_vm0, %v3389_v4 }
0x2ced   :  { %3157 = vmatprep.subr.bf16.mxu0 %v3387_v0 }
0x2cf0   :  { %3159 = vmatpush3.bf16.msra.mxu0 %v3428_v7 }
0x2cf1   :  { %3166 = vmatprep.subr.bf16.mxu0 %v3387_v0 }
0x2dbe   :  { %v1787_v21 = vpop.f32.mrb[16].mxu0 }
0x2dbf   :  { %v1791_v22 = vadd.f32 %v2630_v20, %v1787_v21  ;;  %v2968_v23 = vpop.f32.mrb[17].mxu0 }
0x2dc1   :  { %v2632_v24 = vmul.f32 -1.442695, %v1791_v22 }
0x2dc3   :  { %3323 = vpow2.f32 %v2632_v24 }
0x2dc4   :  { %3325 = vtanh.f32 %v1791_v22 }
0x2dcd   :  { %v3324_v25 = vpop.eup %3323 }
0x2dce   :  { %v1796_v26 = vadd.f32 1.0, %v3324_v25  ;;  %v3326_v27 = vpop.eup %3325 }
0x2dd0   :  { %3327 = vrcp.f32 %v1796_v26 }
0x2dda   :  { %v3328_v28 = vpop.eup %3327 }
0x2ddb   :  { %v1799_v29 = vsel %vm3447_vm3, %v3326_v27, %v3328_v28 }
0x2ddc   :  { %1802 = vrot.lane.b32.xlu0 %v1799_v29, %s3390_s18  ;;  %v1800_v32 = vmul.f32 %v1799_v29, %v1704_v14 }
0x2e4e   :  { %v1803_v30 = vpop.permute.xlu0 %1802 }
0x2e4f   :  { %v1805_v31 = vmul.f32 %v1803_v30, %v1799_v29 }
0x2e51   :  { %1807 = vrot.lane.b32.xlu1 %v1805_v31, %s3391_s19 }
0x2ec3   :  { %v1808_v33 = vpop.permute.xlu1 %1807 }
0x2ec4   :  { %v1810_v34 = vadd.f32 %v1808_v33, %v1800_v32 }
0x2ec6   :  { %3329 = vtanh.f32 %v1810_v34 }
0x2ed0   :  { %v3330_v35 = vpop.eup %3329 }
0x2ed1   :  { %1813 = vrot.lane.b32.xlu0 %v3330_v35, %s3390_s18 }
0x2f43   :  { %v1814_v36 = vpop.permute.xlu0 %1813 }
0x2f44   :  { %v1816_v37 = vmul.f32 %v1814_v36, %v1799_v29 }
0x2f46   :  { %1818 = vrot.lane.b32.xlu1 %v1816_v37, %s3391_s19  ;;  %v2646_v37 = vld [vmem:[%s3908_s0 + $0x28] sm:$0x3] }
0x2fb8   :  { %v1819_v38 = vpop.permute.xlu1 %1818 }
0x2fb9   :  { %2633 = vst.msk [vmem:[%s3909_s2 + $0x20] sm:$0x3] %vm125_vm4, %v1819_v38  ;;  %2978 = vmatmul.mubr.msk.f32.vlgmr.msra.gmra.mrb[16].mxu1 %vm21_vm5, %v1819_v38 }
0x2fba   :  { %3162 = vmatpush3.bf16.msra.mxu1 %v3419_v5  ;;  %2999 = vmatprep.mubr.msk.f32.mxu1 %vm3388_vm0, %v3389_v4 }
0x2fbb   :  { %3163 = vmatprep.subr.bf16.mxu1 %v3387_v0 }
0x2fbe   :  { %3165 = vmatpush3.bf16.msra.mxu1 %v3428_v7 }
0x2fbf   :  { %3172 = vmatprep.subr.bf16.mxu1 %v3387_v0 }
0x308c   :  { %v1893_v40 = vpop.f32.mrb[16].mxu1 }
0x308d   :  { %v1897_v41 = vadd.f32 %v2634_v39, %v1893_v40  ;;  %v2979_v42 = vpop.f32.mrb[17].mxu1 }
0x308f   :  { %v2636_v43 = vmul.f32 -1.442695, %v1897_v41 }
0x3091   :  { %3331 = vpow2.f32 %v2636_v43 }
0x3092   :  { %3333 = vtanh.f32 %v1897_v41 }
0x309b   :  { %v3332_v44 = vpop.eup %3331 }
0x309c   :  { %v1902_v45 = vadd.f32 1.0, %v3332_v44  ;;  %v3334_v46 = vpop.eup %3333 }
0x309e   :  { %3335 = vrcp.f32 %v1902_v45 }
0x30a8   :  { %v3336_v47 = vpop.eup %3335 }
0x30a9   :  { %v1905_v48 = vsel %vm3447_vm3, %v3334_v46, %v3336_v47 }
0x30aa   :  { %1908 = vrot.lane.b32.xlu0 %v1905_v48, %s3390_s18  ;;  %v1906_v51 = vmul.f32 %v1905_v48, %v1810_v34 }
0x311c   :  { %v1909_v49 = vpop.permute.xlu0 %1908 }
0x311d   :  { %v1911_v50 = vmul.f32 %v1909_v49, %v1905_v48 }
0x311f   :  { %1913 = vrot.lane.b32.xlu1 %v1911_v50, %s3391_s19 }
0x3191   :  { %v1914_v52 = vpop.permute.xlu1 %1913 }
0x3192   :  { %v1916_v53 = vadd.f32 %v1914_v52, %v1906_v51 }
0x3194   :  { %3337 = vtanh.f32 %v1916_v53 }
0x319e   :  { %v3338_v54 = vpop.eup %3337 }
0x319f   :  { %1919 = vrot.lane.b32.xlu0 %v3338_v54, %s3390_s18 }
0x3211   :  { %v1920_v55 = vpop.permute.xlu0 %1919 }
0x3212   :  { %v1922_v56 = vmul.f32 %v1920_v55, %v1905_v48 }
0x3214   :  { %1924 = vrot.lane.b32.xlu1 %v1922_v56, %s3391_s19  ;;  %v2650_v56 = vld [vmem:[%s3908_s0 + $0x2a] sm:$0x3] }
0x3286   :  { %v1925_v57 = vpop.permute.xlu1 %1924 }
0x3287   :  { %2637 = vst.msk [vmem:[%s3909_s2 + $0x22] sm:$0x3] %vm125_vm4, %v1925_v57  ;;  %2989 = vmatmul.mubr.msk.f32.vlgmr.msra.gmra.mrb[18].mxu0 %vm21_vm5, %v1925_v57 }
0x3288   :  { %3168 = vmatpush3.bf16.msra.mxu0 %v3419_v5  ;;  %3010 = vmatprep.mubr.msk.f32.mxu0 %vm3388_vm0, %v3389_v4 }
0x3289   :  { %3169 = vmatprep.subr.bf16.mxu0 %v3387_v0 }
0x328c   :  { %3171 = vmatpush3.bf16.msra.mxu0 %v3428_v7 }
0x328d   :  { %3178 = vmatprep.subr.bf16.mxu0 %v3387_v0 }
0x335a   :  { %v1999_v59 = vpop.f32.mrb[18].mxu0 }
0x335b   :  { %v2003_v60 = vadd.f32 %v2638_v58, %v1999_v59  ;;  %v2990_v61 = vpop.f32.mrb[19].mxu0 }
0x335d   :  { %v2640_v62 = vmul.f32 -1.442695, %v2003_v60 }
0x335f   :  { %3339 = vpow2.f32 %v2640_v62 }
0x3360   :  { %3341 = vtanh.f32 %v2003_v60 }
0x3369   :  { %v3340_v63 = vpop.eup %3339 }
0x336a   :  { %v2008_v1 = vadd.f32 1.0, %v3340_v63  ;;  %v3342_v2 = vpop.eup %3341 }
0x336c   :  { %3343 = vrcp.f32 %v2008_v1 }
0x3376   :  { %v3344_v3 = vpop.eup %3343 }
0x3377   :  { %v2011_v6 = vsel %vm3447_vm3, %v3342_v2, %v3344_v3 }
0x3378   :  { %2014 = vrot.lane.b32.xlu0 %v2011_v6, %s3390_s18  ;;  %v2012_v10 = vmul.f32 %v2011_v6, %v1916_v53 }
0x33ea   :  { %v2015_v8 = vpop.permute.xlu0 %2014 }
0x33eb   :  { %v2017_v9 = vmul.f32 %v2015_v8, %v2011_v6 }
0x33ed   :  { %2019 = vrot.lane.b32.xlu1 %v2017_v9, %s3391_s19 }
0x345f   :  { %v2020_v11 = vpop.permute.xlu1 %2019 }
0x3460   :  { %v2022_v12 = vadd.f32 %v2020_v11, %v2012_v10  ;;  %v2654_v11 = vld [vmem:[%s3908_s0 + $0x2c] sm:$0x3] }
0x3462   :  { %3345 = vtanh.f32 %v2022_v12 }
0x346c   :  { %v3346_v13 = vpop.eup %3345 }
0x346d   :  { %2025 = vrot.lane.b32.xlu0 %v3346_v13, %s3390_s18 }
0x34df   :  { %v2026_v14 = vpop.permute.xlu0 %2025 }
0x34e0   :  { %v2028_v15 = vmul.f32 %v2026_v14, %v2011_v6 }
0x34e2   :  { %2030 = vrot.lane.b32.xlu1 %v2028_v15, %s3391_s19 }
0x3554   :  { %v2031_v16 = vpop.permute.xlu1 %2030 }
0x3555   :  { %2641 = vst.msk [vmem:[%s3909_s2 + $0x24] sm:$0x3] %vm125_vm4, %v2031_v16  ;;  %3000 = vmatmul.mubr.msk.f32.vlgmr.msra.gmra.mrb[18].mxu1 %vm21_vm5, %v2031_v16 }
0x3556   :  { %3174 = vmatpush3.bf16.msra.mxu1 %v3419_v5  ;;  %3021 = vmatprep.mubr.msk.f32.mxu1 %vm3388_vm0, %v3389_v4 }
0x3557   :  { %3175 = vmatprep.subr.bf16.mxu1 %v3387_v0 }
0x355a   :  { %3177 = vmatpush3.bf16.msra.mxu1 %v3428_v7 }
0x355b   :  { %3184 = vmatprep.subr.bf16.mxu1 %v3387_v0 }
0x3628   :  { %v2105_v19 = vpop.f32.mrb[18].mxu1 }
0x3629   :  { %v2109_v20 = vadd.f32 %v2642_v18, %v2105_v19  ;;  %v3001_v21 = vpop.f32.mrb[19].mxu1 }
0x362b   :  { %v2644_v22 = vmul.f32 -1.442695, %v2109_v20 }
0x362d   :  { %3347 = vpow2.f32 %v2644_v22 }
0x362e   :  { %3349 = vtanh.f32 %v2109_v20 }
0x3637   :  { %v3348_v23 = vpop.eup %3347 }
0x3638   :  { %v2114_v24 = vadd.f32 1.0, %v3348_v23  ;;  %v3350_v25 = vpop.eup %3349 }
0x363a   :  { %3351 = vrcp.f32 %v2114_v24 }
0x3644   :  { %v3352_v26 = vpop.eup %3351 }
0x3645   :  { %v2117_v27 = vsel %vm3447_vm3, %v3350_v25, %v3352_v26 }
0x3646   :  { %2120 = vrot.lane.b32.xlu0 %v2117_v27, %s3390_s18  ;;  %v2118_v30 = vmul.f32 %v2117_v27, %v2022_v12 }
0x36b8   :  { %v2121_v28 = vpop.permute.xlu0 %2120 }
0x36b9   :  { %v2123_v29 = vmul.f32 %v2121_v28, %v2117_v27 }
0x36bb   :  { %2125 = vrot.lane.b32.xlu1 %v2123_v29, %s3391_s19 }
0x372d   :  { %v2126_v31 = vpop.permute.xlu1 %2125 }
0x372e   :  { %v2128_v32 = vadd.f32 %v2126_v31, %v2118_v30  ;;  %v2658_v31 = vld [vmem:[%s3908_s0 + $0x2e] sm:$0x3] }
0x3730   :  { %3353 = vtanh.f32 %v2128_v32 }
0x373a   :  { %v3354_v33 = vpop.eup %3353 }
0x373b   :  { %2131 = vrot.lane.b32.xlu0 %v3354_v33, %s3390_s18 }
0x37ad   :  { %v2132_v34 = vpop.permute.xlu0 %2131 }
0x37ae   :  { %v2134_v35 = vmul.f32 %v2132_v34, %v2117_v27 }
0x37b0   :  { %2136 = vrot.lane.b32.xlu1 %v2134_v35, %s3391_s19 }
0x3822   :  { %v2137_v36 = vpop.permute.xlu1 %2136 }
0x3823   :  { %2645 = vst.msk [vmem:[%s3909_s2 + $0x26] sm:$0x3] %vm125_vm4, %v2137_v36  ;;  %3011 = vmatmul.mubr.msk.f32.vlgmr.msra.gmra.mrb[20].mxu0 %vm21_vm5, %v2137_v36 }
0x3824   :  { %3180 = vmatpush3.bf16.msra.mxu0 %v3419_v5  ;;  %3032 = vmatprep.mubr.msk.f32.mxu0 %vm3388_vm0, %v3389_v4 }
0x3825   :  { %3181 = vmatprep.subr.bf16.mxu0 %v3387_v0 }
0x3828   :  { %3183 = vmatpush3.bf16.msra.mxu0 %v3428_v7 }
0x38f6   :  { %v2211_v38 = vpop.f32.mrb[20].mxu0 }
0x38f7   :  { %v2215_v39 = vadd.f32 %v2646_v37, %v2211_v38  ;;  %v3012_v40 = vpop.f32.mrb[21].mxu0 }
0x38f9   :  { %v2648_v41 = vmul.f32 -1.442695, %v2215_v39 }
0x38fb   :  { %3355 = vpow2.f32 %v2648_v41 }
0x38fc   :  { %3357 = vtanh.f32 %v2215_v39 }
0x3905   :  { %v3356_v42 = vpop.eup %3355 }
0x3906   :  { %v2220_v43 = vadd.f32 1.0, %v3356_v42  ;;  %v3358_v44 = vpop.eup %3357 }
0x3908   :  { %3359 = vrcp.f32 %v2220_v43 }
0x3912   :  { %v3360_v45 = vpop.eup %3359 }
0x3913   :  { %v2223_v46 = vsel %vm3447_vm3, %v3358_v44, %v3360_v45 }
0x3914   :  { %2226 = vrot.lane.b32.xlu0 %v2223_v46, %s3390_s18  ;;  %v2224_v49 = vmul.f32 %v2223_v46, %v2128_v32 }
0x3986   :  { %v2227_v47 = vpop.permute.xlu0 %2226 }
0x3987   :  { %v2229_v48 = vmul.f32 %v2227_v47, %v2223_v46 }
0x3989   :  { %2231 = vrot.lane.b32.xlu1 %v2229_v48, %s3391_s19 }
0x39fb   :  { %v2232_v50 = vpop.permute.xlu1 %2231 }
0x39fc   :  { %v2234_v51 = vadd.f32 %v2232_v50, %v2224_v49 }
0x39fe   :  { %3361 = vtanh.f32 %v2234_v51 }
0x3a08   :  { %v3362_v52 = vpop.eup %3361 }
0x3a09   :  { %2237 = vrot.lane.b32.xlu0 %v3362_v52, %s3390_s18 }
0x3a7b   :  { %v2238_v53 = vpop.permute.xlu0 %2237 }
0x3a7c   :  { %v2240_v54 = vmul.f32 %v2238_v53, %v2223_v46 }
0x3a7e   :  { %2242 = vrot.lane.b32.xlu1 %v2240_v54, %s3391_s19 }
0x3af0   :  { %v2243_v55 = vpop.permute.xlu1 %2242 }
0x3af1   :  { %2649 = vst.msk [vmem:[%s3909_s2 + $0x28] sm:$0x3] %vm125_vm4, %v2243_v55  ;;  %3022 = vmatmul.mubr.msk.f32.vlgmr.msra.gmra.mrb[20].mxu1 %vm21_vm5, %v2243_v55 }
0x3af2   :  { %3186 = vmatpush3.bf16.msra.mxu1 %v3419_v5  ;;  %3043 = vmatprep.mubr.msk.f32.mxu1 %vm3388_vm0, %v3389_v4 }
0x3af3   :  { %3187 = vmatprep.subr.bf16.mxu1 %v3387_v0 }
0x3af6   :  { %3189 = vmatpush3.bf16.msra.mxu1 %v3428_v7 }
0x3bc4   :  { %v2317_v57 = vpop.f32.mrb[20].mxu1 }
0x3bc5   :  { %v2321_v58 = vadd.f32 %v2650_v56, %v2317_v57  ;;  %v3023_v59 = vpop.f32.mrb[21].mxu1 }
0x3bc7   :  { %v2652_v60 = vmul.f32 -1.442695, %v2321_v58 }
0x3bc9   :  { %3363 = vpow2.f32 %v2652_v60 }
0x3bca   :  { %3365 = vtanh.f32 %v2321_v58 }
0x3bd3   :  { %v3364_v61 = vpop.eup %3363 }
0x3bd4   :  { %v2326_v62 = vadd.f32 1.0, %v3364_v61  ;;  %v3366_v5 = vpop.eup %3365 }
0x3bd6   :  { %3367 = vrcp.f32 %v2326_v62 }
0x3be0   :  { %v3368_v63 = vpop.eup %3367 }
0x3be1   :  { %v2329_v0 = vsel %vm3447_vm3, %v3366_v5, %v3368_v63 }
0x3be2   :  { %2332 = vrot.lane.b32.xlu0 %v2329_v0, %s3390_s18  ;;  %v2330_v1 = vmul.f32 %v2329_v0, %v2234_v51 }
0x3c54   :  { %v2333_v4 = vpop.permute.xlu0 %2332 }
0x3c55   :  { %v2335_v7 = vmul.f32 %v2333_v4, %v2329_v0 }
0x3c57   :  { %2337 = vrot.lane.b32.xlu1 %v2335_v7, %s3391_s19 }
0x3cc9   :  { %v2338_v2 = vpop.permute.xlu1 %2337 }
0x3cca   :  { %v2340_v3 = vadd.f32 %v2338_v2, %v2330_v1 }
0x3ccc   :  { %3369 = vtanh.f32 %v2340_v3 }
0x3cd6   :  { %v3370_v6 = vpop.eup %3369 }
0x3cd7   :  { %2343 = vrot.lane.b32.xlu0 %v3370_v6, %s3390_s18 }
0x3d49   :  { %v2344_v8 = vpop.permute.xlu0 %2343 }
0x3d4a   :  { %v2346_v9 = vmul.f32 %v2344_v8, %v2329_v0 }
0x3d4c   :  { %2348 = vrot.lane.b32.xlu1 %v2346_v9, %s3391_s19 }
0x3dbe   :  { %v2349_v10 = vpop.permute.xlu1 %2348 }
0x3dbf   :  { %2653 = vst.msk [vmem:[%s3909_s2 + $0x2a] sm:$0x3] %vm125_vm4, %v2349_v10  ;;  %3033 = vmatmul.mubr.msk.f32.vlgmr.msra.gmra.mrb[22].mxu0 %vm21_vm5, %v2349_v10 }
0x3e92   :  { %v2423_v12 = vpop.f32.mrb[22].mxu0 }
0x3e93   :  { %v2427_v13 = vadd.f32 %v2654_v11, %v2423_v12  ;;  %v3034_v14 = vpop.f32.mrb[23].mxu0 }
0x3e95   :  { %v2656_v15 = vmul.f32 -1.442695, %v2427_v13 }
0x3e97   :  { %3371 = vpow2.f32 %v2656_v15 }
0x3e98   :  { %3373 = vtanh.f32 %v2427_v13 }
0x3ea1   :  { %v3372_v16 = vpop.eup %3371 }
0x3ea2   :  { %v2432_v18 = vadd.f32 1.0, %v3372_v16  ;;  %v3374_v19 = vpop.eup %3373 }
0x3ea4   :  { %3375 = vrcp.f32 %v2432_v18 }
0x3eae   :  { %v3376_v20 = vpop.eup %3375 }
0x3eaf   :  { %v2435_v21 = vsel %vm3447_vm3, %v3374_v19, %v3376_v20 }
0x3eb0   :  { %2438 = vrot.lane.b32.xlu0 %v2435_v21, %s3390_s18  ;;  %v2436_v24 = vmul.f32 %v2435_v21, %v2340_v3 }
0x3f22   :  { %v2439_v22 = vpop.permute.xlu0 %2438 }
0x3f23   :  { %v2441_v23 = vmul.f32 %v2439_v22, %v2435_v21 }
0x3f25   :  { %2443 = vrot.lane.b32.xlu1 %v2441_v23, %s3391_s19 }
0x3f97   :  { %v2444_v25 = vpop.permute.xlu1 %2443 }
0x3f98   :  { %v2446_v26 = vadd.f32 %v2444_v25, %v2436_v24 }
0x3f9a   :  { %3377 = vtanh.f32 %v2446_v26 }
0x3fa4   :  { %v3378_v27 = vpop.eup %3377 }
0x3fa5   :  { %2449 = vrot.lane.b32.xlu0 %v3378_v27, %s3390_s18 }
0x4017   :  { %v2450_v28 = vpop.permute.xlu0 %2449 }
0x4018   :  { %v2452_v29 = vmul.f32 %v2450_v28, %v2435_v21 }
0x401a   :  { %2454 = vrot.lane.b32.xlu1 %v2452_v29, %s3391_s19 }
0x408c   :  { %v2455_v30 = vpop.permute.xlu1 %2454 }
0x408d   :  { %2657 = vst.msk [vmem:[%s3909_s2 + $0x2c] sm:$0x3] %vm125_vm4, %v2455_v30  ;;  %3044 = vmatmul.mubr.msk.f32.vlgmr.msra.gmra.mrb[22].mxu1 %vm21_vm5, %v2455_v30 }
0x4160   :  { %v2529_v32 = vpop.f32.mrb[22].mxu1 }
0x4161   :  { %v2533_v33 = vadd.f32 %v2658_v31, %v2529_v32  ;;  %v3045_v34 = vpop.f32.mrb[23].mxu1 }
0x4163   :  { %v2660_v35 = vmul.f32 -1.442695, %v2533_v33 }
0x4165   :  { %3379 = vpow2.f32 %v2660_v35 }
0x4166   :  { %3381 = vtanh.f32 %v2533_v33 }
0x416f   :  { %v3380_v36 = vpop.eup %3379 }
0x4170   :  { %v2538_v37 = vadd.f32 1.0, %v3380_v36  ;;  %v3382_v38 = vpop.eup %3381 }
0x4172   :  { %3383 = vrcp.f32 %v2538_v37 }
0x417c   :  { %v3384_v39 = vpop.eup %3383 }
0x417d   :  { %v2541_v40 = vsel %vm3447_vm3, %v3382_v38, %v3384_v39 }
0x417e   :  { %2544 = vrot.lane.b32.xlu0 %v2541_v40, %s3390_s18  ;;  %v2542_v43 = vmul.f32 %v2541_v40, %v2446_v26 }
0x41f0   :  { %v2545_v41 = vpop.permute.xlu0 %2544 }
0x41f1   :  { %v2547_v42 = vmul.f32 %v2545_v41, %v2541_v40 }
0x41f3   :  { %2549 = vrot.lane.b32.xlu1 %v2547_v42, %s3391_s19 }
0x4265   :  { %v2550_v44 = vpop.permute.xlu1 %2549 }
0x4266   :  { %v2552_v45 = vadd.f32 %v2550_v44, %v2542_v43 }
0x4268   :  { %3385 = vtanh.f32 %v2552_v45 }
0x4272   :  { %v3386_v46 = vpop.eup %3385 }
0x4273   :  { %2555 = vrot.lane.b32.xlu0 %v3386_v46, %s3390_s18 }
0x42e5   :  { %v2556_v47 = vpop.permute.xlu0 %2555 }
0x42e6   :  { %v2558_v48 = vmul.f32 %v2556_v47, %v2541_v40 }
0x42e8   :  { %2560 = vrot.lane.b32.xlu1 %v2558_v48, %s3391_s19 }
0x435a   :  { %v2561_v49 = vpop.permute.xlu1 %2560 }
0x435b   :  { %2661 = vst.msk [vmem:[%s3909_s2 + $0x2e] sm:$0x3] %vm125_vm4, %v2561_v49 }

</bundles_post_ra>
